<compile_context>
chip_gen: v7x
topology: tpu7x:2x2x1
jax: 0.10.0
libtpu: 0.0.40
codegen_flags: <defaults>
</compile_context>

<pallas_src>
import functools
import math

import jax
import jax.numpy as jnp
from jax import lax
from jax.experimental import pallas as pl
from jax.experimental.pallas import tpu as pltpu


# ----------------------------------------------------------------------------
# Pallas kernels
# ----------------------------------------------------------------------------
def _branch_kernel(node_ref, w0_ref, b0_ref, adj_ref, w_ref, b_ref, pool_ref,
                   o_ref, h_ref, *, scale, num_layers, dout):
    """One adjacency branch per grid step.

    h = relu(node @ lin0_w + lin0_b)
    for each layer: h = relu(TransformerConv(h, adj))
    o[:, a*D:(a+1)*D] = onehot^T @ h            (global_add_pool as a matmul)

    adj_ref[0][i, j] = multiplicity of edge j -> i (dst-major count matrix). Softmax is
    over incoming edges; duplicate edges are weighted by their count (PyG semantics);
    nodes with no in-edges aggregate to exactly 0.
    """
    # lin0 + relu, recomputed per branch (tiny matmul; saves a whole pallas_call)
    h0 = jnp.dot(node_ref[...], w0_ref[...],
                 preferred_element_type=jnp.float32) + b0_ref[...]
    h_ref[...] = jnp.maximum(h0, 0.0)

    count = adj_ref[0].astype(jnp.float32)                       # [N, N] multiplicities
    # loop-invariant additive mask bias (hoisted: one cmp+select per branch, not per layer)
    neg_bias = jnp.where(count > 0, jnp.float32(0.0), jnp.float32(-1e30))

    for l in range(num_layers):                  # static unroll (num_layers is small)
        h = h_ref[...]                           # [N, H] f32
        w = w_ref[0, l]                          # [H, 4*D] bf16  (wq|wk|wv|wskip)
        b = b_ref[0, l]                          # [1, 4*D] f32   (bq|bk|bv|0)

        # fused q/k/v/skip projection: one long MXU matmul
        proj = jnp.dot(h.astype(jnp.bfloat16), w,
                       preferred_element_type=jnp.float32) + b
        q = proj[:, 0 * dout:1 * dout]
        k = proj[:, 1 * dout:2 * dout]
        v = proj[:, 2 * dout:3 * dout]
        skip = proj[:, 3 * dout:4 * dout]

        # scores[i, j] = <q_i, k_j> / sqrt(D)  (contract last dims; no explicit transpose)
        scores = lax.dot_general(
            q.astype(jnp.bfloat16), k.astype(jnp.bfloat16),
            (((1,), (1,)), ((), ())),
            preferred_element_type=jnp.float32) * scale

        masked = scores + neg_bias
        m = jnp.max(masked, axis=-1, keepdims=True)
        p = jnp.exp(masked - m) * count          # count weights duplicates, zeroes non-edges
        denom = jnp.sum(p, axis=-1, keepdims=True)
        inv = pl.reciprocal(denom + jnp.float32(1e-30), approx=True)   # EUP slot
        attn = jnp.dot(p.astype(jnp.bfloat16), v.astype(jnp.bfloat16),
                       preferred_element_type=jnp.float32) * inv

        h_ref[...] = jnp.maximum(attn + skip, 0.0)   # conv(...).relu()

    # global_add_pool as matmul: [G, N] @ [N, D]; written lane-dense into column block a
    o_ref[...] = jnp.dot(pool_ref[...], h_ref[...].astype(jnp.bfloat16),
                         preferred_element_type=jnp.float32).astype(o_ref.dtype)


def branch_forward(node, lin0_w, lin0_b, adj_all, conv_w, conv_b, onehot_t):
    """Fused lin0 + per-branch TransformerConv stack + pooling.

    node:     [N, KP]         bf16  (feature dim zero-padded to 128 multiple)
    lin0_w:   [KP, H]         bf16
    lin0_b:   [1, H]          f32
    adj_all:  [A, N, N]       bf16  (edge multiplicity counts, dst-major)
    conv_w:   [A, L, H, 4*D]  bf16
    conv_b:   [A, L, 1, 4*D]  f32
    onehot_t: [G, N]          bf16
    returns   [G, A*D]        f32   (branch a occupies columns [a*D, (a+1)*D))
    """
    A, L, H, D4 = conv_w.shape
    D = D4 // 4
    N, KP = node.shape
    G = onehot_t.shape[0]
    scale = 1.0 / math.sqrt(D)

    kernel = functools.partial(_branch_kernel, scale=scale, num_layers=L, dout=D)
    return pl.pallas_call(
        kernel,
        out_shape=jax.ShapeDtypeStruct((G, A * D), jnp.float32),
        grid=(A,),
        in_specs=[
            pl.BlockSpec((N, KP), lambda a: (0, 0)),              # node (shared)
            pl.BlockSpec((KP, H), lambda a: (0, 0)),              # lin0 weight
            pl.BlockSpec((1, H), lambda a: (0, 0)),               # lin0 bias
            pl.BlockSpec((1, N, N), lambda a: (a, 0, 0)),         # adjacency counts, branch a
            pl.BlockSpec((1, L, H, D4), lambda a: (a, 0, 0, 0)),  # fused layer weights
            pl.BlockSpec((1, L, 1, D4), lambda a: (a, 0, 0, 0)),  # fused layer biases
            pl.BlockSpec((G, N), lambda a: (0, 0)),               # one-hot pooling matrix
        ],
        out_specs=pl.BlockSpec((G, D), lambda a: (0, a)),         # column block a of [G, A*D]
        scratch_shapes=[pltpu.VMEM((N, H), jnp.float32)],         # h resident across layers
        compiler_params=pltpu.CompilerParams(
            dimension_semantics=("parallel",),                    # branch per TC on v7x
            vmem_limit_bytes=32 * 1024 * 1024,
        ),
    )(node, lin0_w, lin0_b, adj_all, conv_w, conv_b, onehot_t)


def _head_kernel(x_ref, w1_ref, b1_ref, w2_ref, b2_ref, o_ref):
    y = jnp.dot(x_ref[...].astype(jnp.bfloat16), w1_ref[...],
                preferred_element_type=jnp.float32) + b1_ref[...]
    y = jnp.maximum(y, 0.0)
    # TODO(synk): F.dropout(p=0.5) is identity here (eval mode / training=False).
    o = jnp.dot(y.astype(jnp.bfloat16), w2_ref[...],
                preferred_element_type=jnp.float32) + b2_ref[...]
    o_ref[...] = o.astype(o_ref.dtype)


def head(x, w1, b1, w2, b2):
    """Fused lin1+relu (+dropout identity) + lin2."""
    G, K1 = x.shape
    H1 = w1.shape[1]
    K2, NO = w2.shape
    return pl.pallas_call(
        _head_kernel,
        out_shape=jax.ShapeDtypeStruct((G, NO), jnp.float32),
        grid=(1,),
        in_specs=[
            pl.BlockSpec((G, K1), lambda i: (0, 0)),
            pl.BlockSpec((K1, H1), lambda i: (0, 0)),
            pl.BlockSpec((1, H1), lambda i: (0, 0)),
            pl.BlockSpec((K2, NO), lambda i: (0, 0)),
            pl.BlockSpec((1, NO), lambda i: (0, 0)),
        ],
        out_specs=pl.BlockSpec((G, NO), lambda i: (0, 0)),
    )(x, w1, b1, w2, b2)


# ----------------------------------------------------------------------------
# Parameters (torch-like init) + packing for the fused kernels
# ----------------------------------------------------------------------------
def init_params(key, input_dim, num_adjs=2, num_layers=3):
    hidden = 128
    out_last = 256 // num_adjs   # = 128 for num_adjs=2

    def dense(key, fan_in, fan_out):
        k1, k2 = jax.random.split(key)
        s = 1.0 / math.sqrt(fan_in)
        w = jax.random.uniform(k1, (fan_in, fan_out), jnp.float32, -s, s)
        b = jax.random.uniform(k2, (fan_out,), jnp.float32, -s, s)
        return w, b

    keys = jax.random.split(key, 4 + num_adjs * num_layers)
    raw = {}
    raw["lin0_w"], raw["lin0_b"] = dense(keys[0], input_dim, hidden)
    raw["lin1_w"], raw["lin1_b"] = dense(keys[1], 256, hidden)
    raw["lin2_w"], raw["lin2_b"] = dense(keys[2], hidden, 1)

    convs = []
    ki = 4
    for _ in range(num_adjs):
        layers = []
        for num in range(num_layers):
            d_out = out_last if num == num_layers - 1 else hidden
            k = keys[ki]; ki += 1
            kq, kk_, kv, ks = jax.random.split(k, 4)
            wq, bq = dense(kq, hidden, d_out)
            wk, bk = dense(kk_, hidden, d_out)
            wv, bv = dense(kv, hidden, d_out)
            wskip, _ = dense(ks, hidden, d_out)     # lin_skip: bias=False (module default)
            layers.append(dict(wq=wq, bq=bq, wk=wk, bk=bk, wv=wv, bv=bv, wskip=wskip))
        convs.append(layers)
    raw["convs"] = convs
    return raw


def pack_params(raw):
    """Pack raw torch-like params into the fused layout used by the Pallas kernels."""
    hidden = raw["lin0_w"].shape[1]

    # TODO(synk): fused branch path assumes every conv layer outputs `hidden` features
    # (true for num_adjs=2: 256/2 == 128); generalize with padding for other num_adjs.
    for layers in raw["convs"]:
        for lp in layers:
            assert lp["wq"].shape == (hidden, hidden), "fused path needs Dout == hidden"

    def fuse_layer(lp):
        w = jnp.concatenate([lp["wq"], lp["wk"], lp["wv"], lp["wskip"]], axis=1)
        b = jnp.concatenate([lp["bq"], lp["bk"], lp["bv"],
                             jnp.zeros_like(lp["bq"])], axis=0).reshape(1, -1)
        return w, b

    w_list, b_list = [], []
    for layers in raw["convs"]:
        ws, bs = [], []
        for lp in layers:
            w, b = fuse_layer(lp)
            ws.append(w); bs.append(b)
        w_list.append(jnp.stack(ws))
        b_list.append(jnp.stack(bs))
    conv_w = jnp.stack(w_list).astype(jnp.bfloat16)   # [A, L, H, 4H]
    conv_b = jnp.stack(b_list).astype(jnp.float32)    # [A, L, 1, 4H]

    # pad lin0 contraction dim up to a multiple of 128 (MXU depth)
    k_in = raw["lin0_w"].shape[0]
    kpad = ((k_in + 127) // 128) * 128
    lin0_w = jnp.pad(raw["lin0_w"], ((0, kpad - k_in), (0, 0))).astype(jnp.bfloat16)

    return dict(
        lin0_w=lin0_w,
        lin0_b=raw["lin0_b"].reshape(1, -1).astype(jnp.float32),
        conv_w=conv_w, conv_b=conv_b,
        lin1_w=raw["lin1_w"].astype(jnp.bfloat16),
        lin1_b=raw["lin1_b"].reshape(1, -1).astype(jnp.float32),
        lin2_w=raw["lin2_w"].astype(jnp.bfloat16),
        lin2_b=raw["lin2_b"].reshape(1, -1).astype(jnp.float32),
    )


# ----------------------------------------------------------------------------
# Graph preprocessing (outside jit: built once per graph structure)
# ----------------------------------------------------------------------------
def build_adjacency(edge_indices, num_nodes):
    """Dense dst-major edge-count matrices, stored bf16 (small integer counts are exact).

    count[dst, src] = multiplicity of edge src -> dst (matches PyG scatter softmax on
    multigraphs / duplicate edges).
    """
    # TODO(synk): for large N, replace the dense mask with CSR offsets via scalar prefetch
    # and tile the attention flash-style over (dst, src) blocks.
    mats = []
    for e in edge_indices:
        src, dst = e[0], e[1]
        m = jnp.zeros((num_nodes, num_nodes), jnp.float32).at[dst, src].add(1.0)
        mats.append(m)
    return jnp.stack(mats).astype(jnp.bfloat16)            # [A, N, N]


def build_pool_matrix(batch, num_graphs):
    """one-hot(batch)^T so global_add_pool becomes a matmul inside the branch kernel."""
    return (jnp.arange(num_graphs)[:, None] == batch[None, :]).astype(jnp.bfloat16)


# ----------------------------------------------------------------------------
# Forward (jitted; adjacency / pooling matrices precomputed outside)
# ----------------------------------------------------------------------------
@jax.jit
def trans_conv_forward(params, node, adj_all, onehot_t):
    # zero-pad node feature dim to the padded lin0 weight; bf16 at the MXU input
    kpad = params["lin0_w"].shape[0]
    f = node.shape[1]
    node_p = node if f == kpad else jnp.pad(node, ((0, 0), (0, kpad - f)))
    node_bf = node_p.astype(jnp.bfloat16)

    # fused kernel: lin0+relu, num_layers x TransformerConv(+relu), global_add_pool.
    # Output is already the lane-dense concat [G, A*D] == torch.cat(xi, 1); no reshape.
    xcat = branch_forward(node_bf, params["lin0_w"], params["lin0_b"],
                          adj_all, params["conv_w"], params["conv_b"], onehot_t)

    # lin1 + relu (+dropout identity) + lin2, fused head kernel
    return head(xcat, params["lin1_w"], params["lin1_b"],
                params["lin2_w"], params["lin2_b"])                         # [G, 1]


# ----------------------------------------------------------------------------
if __name__ == "__main__":
    key = jax.random.PRNGKey(0)
    k_param, k_x, k_e1, k_e2 = jax.random.split(key, 4)

    input_dim = 32
    num_nodes = 16
    num_edges = 40
    num_adjs = 2
    num_layers = 3
    num_graphs = 2

    raw = init_params(k_param, input_dim, num_adjs=num_adjs, num_layers=num_layers)
    params = pack_params(raw)

    node = jax.random.normal(k_x, (num_nodes, input_dim), jnp.float32)
    edge_indices = (
        jax.random.randint(k_e1, (2, num_edges), 0, num_nodes, jnp.int32),
        jax.random.randint(k_e2, (2, num_edges), 0, num_nodes, jnp.int32),
    )
    batch = jnp.concatenate([jnp.zeros((8,), jnp.int32), jnp.ones((8,), jnp.int32)])

    # graph-structure preprocessing (outside the jitted forward)
    adj_all = build_adjacency(edge_indices, num_nodes)        # [A, N, N] bf16 counts
    onehot_t = build_pool_matrix(batch, num_graphs)           # [G, N]    bf16

    out = trans_conv_forward(params, node, adj_all, onehot_t)
    out = jax.block_until_ready(out)
    assert out.shape == (num_graphs, 1), out.shape
    assert bool(jnp.all(jnp.isfinite(out)))
    print("KERNEL_OK")
</pallas_src>

<mosaic_0001>
module attributes {stable_mosaic.version = 11 : i64} {
  func.func @_branch_kernel(%arg0: i32, %arg1: memref<16x128xbf16, #tpu.memory_space<vmem>>, %arg2: memref<128x128xbf16, #tpu.memory_space<vmem>>, %arg3: memref<1x128xf32, #tpu.memory_space<vmem>>, %arg4: memref<1x16x16xbf16, #tpu.memory_space<vmem>>, %arg5: memref<1x3x128x512xbf16, #tpu.memory_space<vmem>>, %arg6: memref<1x3x1x512xf32, #tpu.memory_space<vmem>>, %arg7: memref<2x16xbf16, #tpu.memory_space<vmem>>, %arg8: memref<2x128xf32, #tpu.memory_space<vmem>>, %arg9: memref<16x128xf32, #tpu.memory_space<vmem>>) attributes {dimension_semantics = [#tpu.dimension_semantics<parallel>], iteration_bounds = array<i64: 2>, scalar_prefetch = 0 : i64, scratch_operands = 1 : i64, tpu.core_type = #tpu.core_type<tc>, window_params = [{pipeline_mode = #tpu.pipeline_mode<synchronous>, transform_indices = @transform_0, window_bounds = array<i64: 16, 128>}, {pipeline_mode = #tpu.pipeline_mode<synchronous>, transform_indices = @transform_1, window_bounds = array<i64: 128, 128>}, {pipeline_mode = #tpu.pipeline_mode<synchronous>, transform_indices = @transform_2, window_bounds = array<i64: 1, 128>}, {transform_indices = @transform_3, window_bounds = array<i64: 1, 16, 16>}, {transform_indices = @transform_4, window_bounds = array<i64: 1, 3, 128, 512>}, {transform_indices = @transform_5, window_bounds = array<i64: 1, 3, 1, 512>}, {pipeline_mode = #tpu.pipeline_mode<synchronous>, transform_indices = @transform_6, window_bounds = array<i64: 2, 16>}, {transform_indices = @transform_7, window_bounds = array<i64: 2, 128>}]} {
    %c0 = arith.constant 0 : index
    %c0_0 = arith.constant 0 : index
    %0 = vector.load %arg1[%c0, %c0_0] : memref<16x128xbf16, #tpu.memory_space<vmem>>, vector<16x128xbf16>
    %c0_1 = arith.constant 0 : index
    %c0_2 = arith.constant 0 : index
    %1 = vector.load %arg2[%c0_1, %c0_2] : memref<128x128xbf16, #tpu.memory_space<vmem>>, vector<128x128xbf16>
    %cst = arith.constant dense<0.000000e+00> : vector<16x128xf32>
    %2 = tpu.matmul %0, %1, %cst {dimension_numbers = #tpu.dot_dimension_numbers<[1], [0], [0], [1], [0, 0, 1, 1], [], []>} : vector<16x128xbf16>, vector<128x128xbf16>, vector<16x128xf32> -> vector<16x128xf32>
    %c0_3 = arith.constant 0 : index
    %c0_4 = arith.constant 0 : index
    %3 = vector.load %arg3[%c0_3, %c0_4] : memref<1x128xf32, #tpu.memory_space<vmem>>, vector<1x128xf32>
    %4 = vector.broadcast %3 : vector<1x128xf32> to vector<16x128xf32>
    %5 = arith.addf %2, %4 : vector<16x128xf32>
    %cst_5 = arith.constant 0.000000e+00 : f32
    %6 = vector.broadcast %cst_5 : f32 to vector<16x128xf32>
    %7 = arith.maximumf %5, %6 : vector<16x128xf32>
    %c0_6 = arith.constant 0 : index
    %c0_7 = arith.constant 0 : index
    %8 = vector.load %arg9[%c0_6, %c0_7] : memref<16x128xf32, #tpu.memory_space<vmem>>, vector<16x128xf32>
    tpu.vector_store %arg9[%c0_6, %c0_7], %7 {strides = array<i32>} : memref<16x128xf32, #tpu.memory_space<vmem>>, vector<16x128xf32>,
    %c0_8 = arith.constant 0 : index
    %c0_9 = arith.constant 0 : index
    %c0_10 = arith.constant 0 : index
    %9 = vector.load %arg4[%c0_8, %c0_9, %c0_10] : memref<1x16x16xbf16, #tpu.memory_space<vmem>>, vector<1x16x16xbf16>
    %10 = vector.shape_cast %9 : vector<1x16x16xbf16> to vector<16x16xbf16>
    %11 = arith.extf %10 : vector<16x16xbf16> to vector<16x16xf32>
    %cst_11 = arith.constant 0.000000e+00 : f32
    %12 = vector.broadcast %cst_11 : f32 to vector<16x16xf32>
    %13 = arith.cmpf ogt, %11, %12 : vector<16x16xf32>
    %cst_12 = arith.constant 0.000000e+00 : f32
    %cst_13 = arith.constant -1.000000e+30 : f32
    %14 = vector.broadcast %cst_12 : f32 to vector<16x16xf32>
    %15 = vector.broadcast %cst_13 : f32 to vector<16x16xf32>
    %16 = arith.select %13, %14, %15 : vector<16x16xi1>, vector<16x16xf32>
    %c0_14 = arith.constant 0 : index
    %c0_15 = arith.constant 0 : index
    %17 = vector.load %arg9[%c0_14, %c0_15] : memref<16x128xf32, #tpu.memory_space<vmem>>, vector<16x128xf32>
    %c0_16 = arith.constant 0 : index
    %c0_17 = arith.constant 0 : index
    %c0_18 = arith.constant 0 : index
    %c0_19 = arith.constant 0 : index
    %18 = vector.load %arg5[%c0_16, %c0_17, %c0_18, %c0_19] : memref<1x3x128x512xbf16, #tpu.memory_space<vmem>>, vector<1x1x128x512xbf16>
    %19 = vector.shape_cast %18 : vector<1x1x128x512xbf16> to vector<128x512xbf16>
    %c0_20 = arith.constant 0 : index
    %c0_21 = arith.constant 0 : index
    %c0_22 = arith.constant 0 : index
    %c0_23 = arith.constant 0 : index
    %20 = vector.load %arg6[%c0_20, %c0_21, %c0_22, %c0_23] : memref<1x3x1x512xf32, #tpu.memory_space<vmem>>, vector<1x1x1x512xf32>
    %21 = vector.shape_cast %20 : vector<1x1x1x512xf32> to vector<1x512xf32>
    %22 = arith.truncf %17 : vector<16x128xf32> to vector<16x128xbf16>
    %cst_24 = arith.constant dense<0.000000e+00> : vector<16x512xf32>
    %23 = tpu.matmul %22, %19, %cst_24 {dimension_numbers = #tpu.dot_dimension_numbers<[1], [0], [0], [1], [0, 0, 1, 1], [], []>} : vector<16x128xbf16>, vector<128x512xbf16>, vector<16x512xf32> -> vector<16x512xf32>
    %24 = vector.broadcast %21 : vector<1x512xf32> to vector<16x512xf32>
    %25 = arith.addf %23, %24 : vector<16x512xf32>
    %26 = vector.extract_strided_slice %25 {offsets = [0, 0], sizes = [16, 128], strides = [1, 1]} : vector<16x512xf32> to vector<16x128xf32>
    %27 = vector.extract_strided_slice %25 {offsets = [0, 128], sizes = [16, 128], strides = [1, 1]} : vector<16x512xf32> to vector<16x128xf32>
    %28 = vector.extract_strided_slice %25 {offsets = [0, 256], sizes = [16, 128], strides = [1, 1]} : vector<16x512xf32> to vector<16x128xf32>
    %29 = vector.extract_strided_slice %25 {offsets = [0, 384], sizes = [16, 128], strides = [1, 1]} : vector<16x512xf32> to vector<16x128xf32>
    %30 = arith.truncf %26 : vector<16x128xf32> to vector<16x128xbf16>
    %31 = arith.truncf %27 : vector<16x128xf32> to vector<16x128xbf16>
    %cst_25 = arith.constant dense<0.000000e+00> : vector<16x16xf32>
    %32 = tpu.matmul %30, %31, %cst_25 {dimension_numbers = #tpu.dot_dimension_numbers<[1], [1], [0], [0], [0, 0, 1, 0], [], []>} : vector<16x128xbf16>, vector<16x128xbf16>, vector<16x16xf32> -> vector<16x16xf32>
    %cst_26 = arith.constant 0.0883883461 : f32
    %33 = vector.broadcast %cst_26 : f32 to vector<16x16xf32>
    %34 = arith.mulf %32, %33 : vector<16x16xf32>
    %35 = arith.addf %34, %16 : vector<16x16xf32>
    %cst_27 = arith.constant dense<0xFF800000> : vector<16xf32>
    %36 = vector.multi_reduction <maximumf>, %35, %cst_27 [1] : vector<16x16xf32> to vector<16xf32>
    %37 = vector.shape_cast %36 : vector<16xf32> to vector<16x1xf32>
    %38 = vector.broadcast %37 : vector<16x1xf32> to vector<16x16xf32>
    %39 = arith.subf %35, %38 : vector<16x16xf32>
    %40 = math.exp %39 : vector<16x16xf32>
    %41 = arith.mulf %40, %11 : vector<16x16xf32>
    %cst_28 = arith.constant dense<0.000000e+00> : vector<16xf32>
    %42 = vector.multi_reduction <add>, %41, %cst_28 [1] : vector<16x16xf32> to vector<16xf32>
    %43 = vector.shape_cast %42 : vector<16xf32> to vector<16x1xf32>
    %cst_29 = arith.constant 1.000000e-30 : f32
    %44 = vector.broadcast %cst_29 : f32 to vector<16x1xf32>
    %45 = arith.addf %43, %44 : vector<16x1xf32>
    %46 = tpu.reciprocal %45 {approx = true} : vector<16x1xf32> -> vector<16x1xf32>
    %47 = arith.truncf %41 : vector<16x16xf32> to vector<16x16xbf16>
    %48 = arith.truncf %28 : vector<16x128xf32> to vector<16x128xbf16>
    %cst_30 = arith.constant dense<0.000000e+00> : vector<16x128xf32>
    %49 = tpu.matmul %47, %48, %cst_30 {dimension_numbers = #tpu.dot_dimension_numbers<[1], [0], [0], [1], [0, 0, 1, 1], [], []>} : vector<16x16xbf16>, vector<16x128xbf16>, vector<16x128xf32> -> vector<16x128xf32>
    %50 = vector.broadcast %46 : vector<16x1xf32> to vector<16x128xf32>
    %51 = arith.mulf %49, %50 : vector<16x128xf32>
    %52 = arith.addf %51, %29 : vector<16x128xf32>
    %cst_31 = arith.constant 0.000000e+00 : f32
    %53 = vector.broadcast %cst_31 : f32 to vector<16x128xf32>
    %54 = arith.maximumf %52, %53 : vector<16x128xf32>
    %c0_32 = arith.constant 0 : index
    %c0_33 = arith.constant 0 : index
    %55 = vector.load %arg9[%c0_32, %c0_33] : memref<16x128xf32, #tpu.memory_space<vmem>>, vector<16x128xf32>
    tpu.vector_store %arg9[%c0_32, %c0_33], %54 {strides = array<i32>} : memref<16x128xf32, #tpu.memory_space<vmem>>, vector<16x128xf32>,
    %c0_34 = arith.constant 0 : index
    %c0_35 = arith.constant 0 : index
    %56 = vector.load %arg9[%c0_34, %c0_35] : memref<16x128xf32, #tpu.memory_space<vmem>>, vector<16x128xf32>
    %c0_36 = arith.constant 0 : index
    %c1 = arith.constant 1 : index
    %c0_37 = arith.constant 0 : index
    %c0_38 = arith.constant 0 : index
    %57 = vector.load %arg5[%c0_36, %c1, %c0_37, %c0_38] : memref<1x3x128x512xbf16, #tpu.memory_space<vmem>>, vector<1x1x128x512xbf16>
    %58 = vector.shape_cast %57 : vector<1x1x128x512xbf16> to vector<128x512xbf16>
    %c0_39 = arith.constant 0 : index
    %c1_40 = arith.constant 1 : index
    %c0_41 = arith.constant 0 : index
    %c0_42 = arith.constant 0 : index
    %59 = vector.load %arg6[%c0_39, %c1_40, %c0_41, %c0_42] : memref<1x3x1x512xf32, #tpu.memory_space<vmem>>, vector<1x1x1x512xf32>
    %60 = vector.shape_cast %59 : vector<1x1x1x512xf32> to vector<1x512xf32>
    %61 = arith.truncf %56 : vector<16x128xf32> to vector<16x128xbf16>
    %cst_43 = arith.constant dense<0.000000e+00> : vector<16x512xf32>
    %62 = tpu.matmul %61, %58, %cst_43 {dimension_numbers = #tpu.dot_dimension_numbers<[1], [0], [0], [1], [0, 0, 1, 1], [], []>} : vector<16x128xbf16>, vector<128x512xbf16>, vector<16x512xf32> -> vector<16x512xf32>
    %63 = vector.broadcast %60 : vector<1x512xf32> to vector<16x512xf32>
    %64 = arith.addf %62, %63 : vector<16x512xf32>
    %65 = vector.extract_strided_slice %64 {offsets = [0, 0], sizes = [16, 128], strides = [1, 1]} : vector<16x512xf32> to vector<16x128xf32>
    %66 = vector.extract_strided_slice %64 {offsets = [0, 128], sizes = [16, 128], strides = [1, 1]} : vector<16x512xf32> to vector<16x128xf32>
    %67 = vector.extract_strided_slice %64 {offsets = [0, 256], sizes = [16, 128], strides = [1, 1]} : vector<16x512xf32> to vector<16x128xf32>
    %68 = vector.extract_strided_slice %64 {offsets = [0, 384], sizes = [16, 128], strides = [1, 1]} : vector<16x512xf32> to vector<16x128xf32>
    %69 = arith.truncf %65 : vector<16x128xf32> to vector<16x128xbf16>
    %70 = arith.truncf %66 : vector<16x128xf32> to vector<16x128xbf16>
    %cst_44 = arith.constant dense<0.000000e+00> : vector<16x16xf32>
    %71 = tpu.matmul %69, %70, %cst_44 {dimension_numbers = #tpu.dot_dimension_numbers<[1], [1], [0], [0], [0, 0, 1, 0], [], []>} : vector<16x128xbf16>, vector<16x128xbf16>, vector<16x16xf32> -> vector<16x16xf32>
    %cst_45 = arith.constant 0.0883883461 : f32
    %72 = vector.broadcast %cst_45 : f32 to vector<16x16xf32>
    %73 = arith.mulf %71, %72 : vector<16x16xf32>
    %74 = arith.addf %73, %16 : vector<16x16xf32>
    %cst_46 = arith.constant dense<0xFF800000> : vector<16xf32>
    %75 = vector.multi_reduction <maximumf>, %74, %cst_46 [1] : vector<16x16xf32> to vector<16xf32>
    %76 = vector.shape_cast %75 : vector<16xf32> to vector<16x1xf32>
    %77 = vector.broadcast %76 : vector<16x1xf32> to vector<16x16xf32>
    %78 = arith.subf %74, %77 : vector<16x16xf32>
    %79 = math.exp %78 : vector<16x16xf32>
    %80 = arith.mulf %79, %11 : vector<16x16xf32>
    %cst_47 = arith.constant dense<0.000000e+00> : vector<16xf32>
    %81 = vector.multi_reduction <add>, %80, %cst_47 [1] : vector<16x16xf32> to vector<16xf32>
    %82 = vector.shape_cast %81 : vector<16xf32> to vector<16x1xf32>
    %cst_48 = arith.constant 1.000000e-30 : f32
    %83 = vector.broadcast %cst_48 : f32 to vector<16x1xf32>
    %84 = arith.addf %82, %83 : vector<16x1xf32>
    %85 = tpu.reciprocal %84 {approx = true} : vector<16x1xf32> -> vector<16x1xf32>
    %86 = arith.truncf %80 : vector<16x16xf32> to vector<16x16xbf16>
    %87 = arith.truncf %67 : vector<16x128xf32> to vector<16x128xbf16>
    %cst_49 = arith.constant dense<0.000000e+00> : vector<16x128xf32>
    %88 = tpu.matmul %86, %87, %cst_49 {dimension_numbers = #tpu.dot_dimension_numbers<[1], [0], [0], [1], [0, 0, 1, 1], [], []>} : vector<16x16xbf16>, vector<16x128xbf16>, vector<16x128xf32> -> vector<16x128xf32>
    %89 = vector.broadcast %85 : vector<16x1xf32> to vector<16x128xf32>
    %90 = arith.mulf %88, %89 : vector<16x128xf32>
    %91 = arith.addf %90, %68 : vector<16x128xf32>
    %cst_50 = arith.constant 0.000000e+00 : f32
    %92 = vector.broadcast %cst_50 : f32 to vector<16x128xf32>
    %93 = arith.maximumf %91, %92 : vector<16x128xf32>
    %c0_51 = arith.constant 0 : index
    %c0_52 = arith.constant 0 : index
    %94 = vector.load %arg9[%c0_51, %c0_52] : memref<16x128xf32, #tpu.memory_space<vmem>>, vector<16x128xf32>
    tpu.vector_store %arg9[%c0_51, %c0_52], %93 {strides = array<i32>} : memref<16x128xf32, #tpu.memory_space<vmem>>, vector<16x128xf32>,
    %c0_53 = arith.constant 0 : index
    %c0_54 = arith.constant 0 : index
    %95 = vector.load %arg9[%c0_53, %c0_54] : memref<16x128xf32, #tpu.memory_space<vmem>>, vector<16x128xf32>
    %c0_55 = arith.constant 0 : index
    %c2 = arith.constant 2 : index
    %c0_56 = arith.constant 0 : index
    %c0_57 = arith.constant 0 : index
    %96 = vector.load %arg5[%c0_55, %c2, %c0_56, %c0_57] : memref<1x3x128x512xbf16, #tpu.memory_space<vmem>>, vector<1x1x128x512xbf16>
    %97 = vector.shape_cast %96 : vector<1x1x128x512xbf16> to vector<128x512xbf16>
    %c0_58 = arith.constant 0 : index
    %c2_59 = arith.constant 2 : index
    %c0_60 = arith.constant 0 : index
    %c0_61 = arith.constant 0 : index
    %98 = vector.load %arg6[%c0_58, %c2_59, %c0_60, %c0_61] : memref<1x3x1x512xf32, #tpu.memory_space<vmem>>, vector<1x1x1x512xf32>
    %99 = vector.shape_cast %98 : vector<1x1x1x512xf32> to vector<1x512xf32>
    %100 = arith.truncf %95 : vector<16x128xf32> to vector<16x128xbf16>
    %cst_62 = arith.constant dense<0.000000e+00> : vector<16x512xf32>
    %101 = tpu.matmul %100, %97, %cst_62 {dimension_numbers = #tpu.dot_dimension_numbers<[1], [0], [0], [1], [0, 0, 1, 1], [], []>} : vector<16x128xbf16>, vector<128x512xbf16>, vector<16x512xf32> -> vector<16x512xf32>
    %102 = vector.broadcast %99 : vector<1x512xf32> to vector<16x512xf32>
    %103 = arith.addf %101, %102 : vector<16x512xf32>
    %104 = vector.extract_strided_slice %103 {offsets = [0, 0], sizes = [16, 128], strides = [1, 1]} : vector<16x512xf32> to vector<16x128xf32>
    %105 = vector.extract_strided_slice %103 {offsets = [0, 128], sizes = [16, 128], strides = [1, 1]} : vector<16x512xf32> to vector<16x128xf32>
    %106 = vector.extract_strided_slice %103 {offsets = [0, 256], sizes = [16, 128], strides = [1, 1]} : vector<16x512xf32> to vector<16x128xf32>
    %107 = vector.extract_strided_slice %103 {offsets = [0, 384], sizes = [16, 128], strides = [1, 1]} : vector<16x512xf32> to vector<16x128xf32>
    %108 = arith.truncf %104 : vector<16x128xf32> to vector<16x128xbf16>
    %109 = arith.truncf %105 : vector<16x128xf32> to vector<16x128xbf16>
    %cst_63 = arith.constant dense<0.000000e+00> : vector<16x16xf32>
    %110 = tpu.matmul %108, %109, %cst_63 {dimension_numbers = #tpu.dot_dimension_numbers<[1], [1], [0], [0], [0, 0, 1, 0], [], []>} : vector<16x128xbf16>, vector<16x128xbf16>, vector<16x16xf32> -> vector<16x16xf32>
    %cst_64 = arith.constant 0.0883883461 : f32
    %111 = vector.broadcast %cst_64 : f32 to vector<16x16xf32>
    %112 = arith.mulf %110, %111 : vector<16x16xf32>
    %113 = arith.addf %112, %16 : vector<16x16xf32>
    %cst_65 = arith.constant dense<0xFF800000> : vector<16xf32>
    %114 = vector.multi_reduction <maximumf>, %113, %cst_65 [1] : vector<16x16xf32> to vector<16xf32>
    %115 = vector.shape_cast %114 : vector<16xf32> to vector<16x1xf32>
    %116 = vector.broadcast %115 : vector<16x1xf32> to vector<16x16xf32>
    %117 = arith.subf %113, %116 : vector<16x16xf32>
    %118 = math.exp %117 : vector<16x16xf32>
    %119 = arith.mulf %118, %11 : vector<16x16xf32>
    %cst_66 = arith.constant dense<0.000000e+00> : vector<16xf32>
    %120 = vector.multi_reduction <add>, %119, %cst_66 [1] : vector<16x16xf32> to vector<16xf32>
    %121 = vector.shape_cast %120 : vector<16xf32> to vector<16x1xf32>
    %cst_67 = arith.constant 1.000000e-30 : f32
    %122 = vector.broadcast %cst_67 : f32 to vector<16x1xf32>
    %123 = arith.addf %121, %122 : vector<16x1xf32>
    %124 = tpu.reciprocal %123 {approx = true} : vector<16x1xf32> -> vector<16x1xf32>
    %125 = arith.truncf %119 : vector<16x16xf32> to vector<16x16xbf16>
    %126 = arith.truncf %106 : vector<16x128xf32> to vector<16x128xbf16>
    %cst_68 = arith.constant dense<0.000000e+00> : vector<16x128xf32>
    %127 = tpu.matmul %125, %126, %cst_68 {dimension_numbers = #tpu.dot_dimension_numbers<[1], [0], [0], [1], [0, 0, 1, 1], [], []>} : vector<16x16xbf16>, vector<16x128xbf16>, vector<16x128xf32> -> vector<16x128xf32>
    %128 = vector.broadcast %124 : vector<16x1xf32> to vector<16x128xf32>
    %129 = arith.mulf %127, %128 : vector<16x128xf32>
    %130 = arith.addf %129, %107 : vector<16x128xf32>
    %cst_69 = arith.constant 0.000000e+00 : f32
    %131 = vector.broadcast %cst_69 : f32 to vector<16x128xf32>
    %132 = arith.maximumf %130, %131 : vector<16x128xf32>
    %c0_70 = arith.constant 0 : index
    %c0_71 = arith.constant 0 : index
    %133 = vector.load %arg9[%c0_70, %c0_71] : memref<16x128xf32, #tpu.memory_space<vmem>>, vector<16x128xf32>
    tpu.vector_store %arg9[%c0_70, %c0_71], %132 {strides = array<i32>} : memref<16x128xf32, #tpu.memory_space<vmem>>, vector<16x128xf32>,
    %c0_72 = arith.constant 0 : index
    %c0_73 = arith.constant 0 : index
    %134 = vector.load %arg7[%c0_72, %c0_73] : memref<2x16xbf16, #tpu.memory_space<vmem>>, vector<2x16xbf16>
    %c0_74 = arith.constant 0 : index
    %c0_75 = arith.constant 0 : index
    %135 = vector.load %arg9[%c0_74, %c0_75] : memref<16x128xf32, #tpu.memory_space<vmem>>, vector<16x128xf32>
    %136 = arith.truncf %135 : vector<16x128xf32> to vector<16x128xbf16>
    %cst_76 = arith.constant dense<0.000000e+00> : vector<2x128xf32>
    %137 = tpu.matmul %134, %136, %cst_76 {dimension_numbers = #tpu.dot_dimension_numbers<[1], [0], [0], [1], [0, 0, 1, 1], [], []>} : vector<2x16xbf16>, vector<16x128xbf16>, vector<2x128xf32> -> vector<2x128xf32>
    %c0_77 = arith.constant 0 : index
    %c0_78 = arith.constant 0 : index
    %138 = vector.load %arg8[%c0_77, %c0_78] : memref<2x128xf32, #tpu.memory_space<vmem>>, vector<2x128xf32>
    tpu.vector_store %arg8[%c0_77, %c0_78], %137 {strides = array<i32>} : memref<2x128xf32, #tpu.memory_space<vmem>>, vector<2x128xf32>,
    return
  }
  func.func @transform_0(%arg0: i32) -> (i32, i32) {
    %c0_i32 = arith.constant 0 : i32
    %c0_i32_0 = arith.constant 0 : i32
    %c0_i32_1 = arith.constant 0 : i32
    return %c0_i32, %c0_i32_0 : i32, i32
  }
  func.func @transform_1(%arg0: i32) -> (i32, i32) {
    %c0_i32 = arith.constant 0 : i32
    %c0_i32_0 = arith.constant 0 : i32
    %c0_i32_1 = arith.constant 0 : i32
    return %c0_i32, %c0_i32_0 : i32, i32
  }
  func.func @transform_2(%arg0: i32) -> (i32, i32) {
    %c0_i32 = arith.constant 0 : i32
    %c0_i32_0 = arith.constant 0 : i32
    %c0_i32_1 = arith.constant 0 : i32
    return %c0_i32, %c0_i32_0 : i32, i32
  }
  func.func @transform_3(%arg0: i32) -> (i32, i32, i32) {
    %c0_i32 = arith.constant 0 : i32
    %c0_i32_0 = arith.constant 0 : i32
    %c0_i32_1 = arith.constant 0 : i32
    return %arg0, %c0_i32, %c0_i32_0 : i32, i32, i32
  }
  func.func @transform_4(%arg0: i32) -> (i32, i32, i32, i32) {
    %c0_i32 = arith.constant 0 : i32
    %c0_i32_0 = arith.constant 0 : i32
    %c0_i32_1 = arith.constant 0 : i32
    %c0_i32_2 = arith.constant 0 : i32
    return %arg0, %c0_i32, %c0_i32_0, %c0_i32_1 : i32, i32, i32, i32
  }
  func.func @transform_5(%arg0: i32) -> (i32, i32, i32, i32) {
    %c0_i32 = arith.constant 0 : i32
    %c0_i32_0 = arith.constant 0 : i32
    %c0_i32_1 = arith.constant 0 : i32
    %c0_i32_2 = arith.constant 0 : i32
    return %arg0, %c0_i32, %c0_i32_0, %c0_i32_1 : i32, i32, i32, i32
  }
  func.func @transform_6(%arg0: i32) -> (i32, i32) {
    %c0_i32 = arith.constant 0 : i32
    %c0_i32_0 = arith.constant 0 : i32
    %c0_i32_1 = arith.constant 0 : i32
    return %c0_i32, %c0_i32_0 : i32, i32
  }
  func.func @transform_7(%arg0: i32) -> (i32, i32) {
    %c0_i32 = arith.constant 0 : i32
    %c0_i32_0 = arith.constant 0 : i32
    return %c0_i32, %arg0 : i32, i32
  }
}

module attributes {stable_mosaic.version = 11 : i64} {
  func.func @_head_kernel(%arg0: i32, %arg1: memref<2x256xf32, #tpu.memory_space<vmem>>, %arg2: memref<256x128xbf16, #tpu.memory_space<vmem>>, %arg3: memref<1x128xf32, #tpu.memory_space<vmem>>, %arg4: memref<128x1xbf16, #tpu.memory_space<vmem>>, %arg5: memref<1x1xf32, #tpu.memory_space<vmem>>, %arg6: memref<2x1xf32, #tpu.memory_space<vmem>>) attributes {dimension_semantics = [#tpu.dimension_semantics<arbitrary>], iteration_bounds = array<i64: 1>, scalar_prefetch = 0 : i64, scratch_operands = 0 : i64, tpu.core_type = #tpu.core_type<tc>, window_params = [{pipeline_mode = #tpu.pipeline_mode<synchronous>, transform_indices = @transform_0, window_bounds = array<i64: 2, 256>}, {pipeline_mode = #tpu.pipeline_mode<synchronous>, transform_indices = @transform_1, window_bounds = array<i64: 256, 128>}, {pipeline_mode = #tpu.pipeline_mode<synchronous>, transform_indices = @transform_2, window_bounds = array<i64: 1, 128>}, {pipeline_mode = #tpu.pipeline_mode<synchronous>, transform_indices = @transform_3, window_bounds = array<i64: 128, 1>}, {pipeline_mode = #tpu.pipeline_mode<synchronous>, transform_indices = @transform_4, window_bounds = array<i64: 1, 1>}, {pipeline_mode = #tpu.pipeline_mode<synchronous>, transform_indices = @transform_5, window_bounds = array<i64: 2, 1>}]} {
    %c0 = arith.constant 0 : index
    %c0_0 = arith.constant 0 : index
    %0 = vector.load %arg1[%c0, %c0_0] : memref<2x256xf32, #tpu.memory_space<vmem>>, vector<2x256xf32>
    %1 = arith.truncf %0 : vector<2x256xf32> to vector<2x256xbf16>
    %c0_1 = arith.constant 0 : index
    %c0_2 = arith.constant 0 : index
    %2 = vector.load %arg2[%c0_1, %c0_2] : memref<256x128xbf16, #tpu.memory_space<vmem>>, vector<256x128xbf16>
    %cst = arith.constant dense<0.000000e+00> : vector<2x128xf32>
    %3 = tpu.matmul %1, %2, %cst {dimension_numbers = #tpu.dot_dimension_numbers<[1], [0], [0], [1], [0, 0, 1, 1], [], []>} : vector<2x256xbf16>, vector<256x128xbf16>, vector<2x128xf32> -> vector<2x128xf32>
    %c0_3 = arith.constant 0 : index
    %c0_4 = arith.constant 0 : index
    %4 = vector.load %arg3[%c0_3, %c0_4] : memref<1x128xf32, #tpu.memory_space<vmem>>, vector<1x128xf32>
    %5 = vector.broadcast %4 : vector<1x128xf32> to vector<2x128xf32>
    %6 = arith.addf %3, %5 : vector<2x128xf32>
    %cst_5 = arith.constant 0.000000e+00 : f32
    %7 = vector.broadcast %cst_5 : f32 to vector<2x128xf32>
    %8 = arith.maximumf %6, %7 : vector<2x128xf32>
    %9 = arith.truncf %8 : vector<2x128xf32> to vector<2x128xbf16>
    %c0_6 = arith.constant 0 : index
    %c0_7 = arith.constant 0 : index
    %10 = vector.load %arg4[%c0_6, %c0_7] : memref<128x1xbf16, #tpu.memory_space<vmem>>, vector<128x1xbf16>
    %cst_8 = arith.constant dense<0.000000e+00> : vector<2x1xf32>
    %11 = tpu.matmul %9, %10, %cst_8 {dimension_numbers = #tpu.dot_dimension_numbers<[1], [0], [0], [1], [0, 0, 1, 1], [], []>} : vector<2x128xbf16>, vector<128x1xbf16>, vector<2x1xf32> -> vector<2x1xf32>
    %c0_9 = arith.constant 0 : index
    %c0_10 = arith.constant 0 : index
    %12 = vector.load %arg5[%c0_9, %c0_10] : memref<1x1xf32, #tpu.memory_space<vmem>>, vector<1x1xf32>
    %13 = vector.broadcast %12 : vector<1x1xf32> to vector<2x1xf32>
    %14 = arith.addf %11, %13 : vector<2x1xf32>
    %c0_11 = arith.constant 0 : index
    %c0_12 = arith.constant 0 : index
    %15 = vector.load %arg6[%c0_11, %c0_12] : memref<2x1xf32, #tpu.memory_space<vmem>>, vector<2x1xf32>
    tpu.vector_store %arg6[%c0_11, %c0_12], %14 {strides = array<i32>} : memref<2x1xf32, #tpu.memory_space<vmem>>, vector<2x1xf32>,
    return
  }
  func.func @transform_0(%arg0: i32) -> (i32, i32) {
    %c0_i32 = arith.constant 0 : i32
    %c0_i32_0 = arith.constant 0 : i32
    %c0_i32_1 = arith.constant 0 : i32
    return %c0_i32, %c0_i32_0 : i32, i32
  }
  func.func @transform_1(%arg0: i32) -> (i32, i32) {
    %c0_i32 = arith.constant 0 : i32
    %c0_i32_0 = arith.constant 0 : i32
    %c0_i32_1 = arith.constant 0 : i32
    return %c0_i32, %c0_i32_0 : i32, i32
  }
  func.func @transform_2(%arg0: i32) -> (i32, i32) {
    %c0_i32 = arith.constant 0 : i32
    %c0_i32_0 = arith.constant 0 : i32
    %c0_i32_1 = arith.constant 0 : i32
    return %c0_i32, %c0_i32_0 : i32, i32
  }
  func.func @transform_3(%arg0: i32) -> (i32, i32) {
    %c0_i32 = arith.constant 0 : i32
    %c0_i32_0 = arith.constant 0 : i32
    %c0_i32_1 = arith.constant 0 : i32
    return %c0_i32, %c0_i32_0 : i32, i32
  }
  func.func @transform_4(%arg0: i32) -> (i32, i32) {
    %c0_i32 = arith.constant 0 : i32
    %c0_i32_0 = arith.constant 0 : i32
    %c0_i32_1 = arith.constant 0 : i32
    return %c0_i32, %c0_i32_0 : i32, i32
  }
  func.func @transform_5(%arg0: i32) -> (i32, i32) {
    %c0_i32 = arith.constant 0 : i32
    %c0_i32_0 = arith.constant 0 : i32
    %c0_i32_1 = arith.constant 0 : i32
    return %c0_i32, %c0_i32_0 : i32, i32
  }
}

</mosaic_0001>

<bundles_post_ra>
// kernel: trans_conv_forward.3
= control target key start
LH: loop header
LB: loop body
LE: loop exit
PB: predicated region body
PF: predicated region fallthrough
CT: control target
= control target key end

     0   :  { %v435_v1 = vmov 0.0   ;;  %vm436_vm0 = vmmov 0   ;;  %vm325_vm1 = vcmask 1024   ;;  %s560_s1 = inlined_call_operand.vmem [shape: bf16[256,128], index: 1, kind: input, shape index: {}]   ;;  %s561_s0 = inlined_call_operand.vmem [shape: f32[2,256], index: 0, kind: input, shape index: {}]   ;;  %s562_s3 = inlined_call_operand.vmem [shape: bf16[128,1], index: 3, kind: input, shape index: {}]   ;;  %s563_s4 = inlined_call_operand.<no memory space> [shape: f32[1,1], index: 4, kind: input, shape index: {}]   ;;  %s564_s2 = inlined_call_operand.vmem [shape: f32[1,128], index: 2, kind: input, shape index: {}]   ;;  %s565_s5 = inlined_call_operand.vmem [shape: f32[2,1], index: 5, kind: output, shape index: {}]  }
   0x1   :  { %v411_v0 = vld [vmem:[%s560_s1 + $0x40] sm:$0xff]   ;;  %389 = vmatprep.subr.bf16.mxu1 %v435_v1  ;;  %v413_v3 = vld [vmem:[%s560_s1 + $0x48] sm:$0xff]   ;;  %v415_v5 = vld [vmem:[%s560_s1 + $0x50] sm:$0xff]   ;;  %405 = vmatprep.mubr.msk.bf16.mxu1 %vm436_vm0, %v435_v1  ;;  %v10_v29 = vstv %s563_s4 }
   0x2   :  { %v412_v2 = vld [vmem:[%s560_s1] sm:$0xff]   ;;  %358 = vmatprep.subr.bf16.mxu0 %v411_v0  ;;  %v414_v4 = vld [vmem:[%s560_s1 + $0x8] sm:$0xff]   ;;  %v416_v6 = vld [vmem:[%s560_s1 + $0x10] sm:$0xff]   ;;  %11 = vst [vmem:[#allocation2] sm:$0x1] %v10_v29 }
   0x3   :  { %359 = vmatpush3.bf16.msra.mxu0 %v412_v2  ;;  %v417_v7 = vld [vmem:[%s560_s1 + $0x58] sm:$0xff]   ;;  %v419_v9 = vld [vmem:[%s560_s1 + $0x60] sm:$0xff]   ;;  %v421_v11 = vld [vmem:[%s560_s1 + $0x68] sm:$0xff]  }
   0x4   :  { %360 = vmatprep.subr.bf16.mxu0 %v413_v3  ;;  %v418_v8 = vld [vmem:[%s560_s1 + $0x18] sm:$0xff]   ;;  %v420_v10 = vld [vmem:[%s560_s1 + $0x20] sm:$0xff]   ;;  %v422_v15 = vld [vmem:[%s560_s1 + $0x28] sm:$0xff]  }
   0x5   :  { %v331_v12 = vld.sshfl [vmem:[%s561_s0] sm:$0x33 pattern:$0x76325410]  ;;  %v428_v17 = vld [vmem:[%s562_s3 + $0x8] sm:$0xff]   ;;  %v423_v18 = vld [vmem:[%s560_s1 + $0x70] sm:$0xff]  }
   0x6   :  { %v32_v13 = vcombine.high %v331_v12, %v331_v12  ;;  %v427_v14 = vld [vmem:[%s562_s3] sm:$0xff]   ;;  %v424_v19 = vld [vmem:[%s560_s1 + $0x30] sm:$0xff]   ;;  %v425_v21 = vld [vmem:[%s560_s1 + $0x78] sm:$0xff]   ;;  %v35_v24 = vpack.c.bf16 %v331_v12, %v331_v12 }
   0x7   :  { %361 = vmatpush3.bf16.msra.mxu0 %v414_v4  ;;  %390 = vmatpush3.bf16.msra.mxu1 %v427_v14  ;;  %v429_v20 = vld [vmem:[%s562_s3 + $0x10] sm:$0xff]   ;;  %v426_v22 = vld [vmem:[%s560_s1 + $0x38] sm:$0xff]   ;;  %v431_v25 = vld [vmem:[%s562_s3 + $0x20] sm:$0xff]  }
   0x8   :  { %362 = vmatprep.subr.bf16.mxu0 %v415_v5  ;;  %v36_v16 = vpack.c.bf16 %v32_v13, %v32_v13  ;;  %391 = vmatprep.subr.bf16.mxu1 %v435_v1  ;;  %v430_v23 = vld [vmem:[%s562_s3 + $0x18] sm:$0xff]   ;;  %v432_v26 = vld [vmem:[%s562_s3 + $0x28] sm:$0xff]   ;;  %v433_v27 = vld [vmem:[%s562_s3 + $0x30] sm:$0xff]  }
   0x9   :  { %v434_v28 = vld [vmem:[%s562_s3 + $0x38] sm:$0xff]   ;;  %v332_v31 = vld [vmem:[%s564_s2] ss:$0 sm:$0xff] }
   0xa   :  { %204 = vmatprep.mubr.bf16.mxu0 %v36_v16  ;;  %v349_v39 = vld [vmem:[#allocation2] ss:$0 sm:$0xff] }
   0xb   :  { %363 = vmatpush3.bf16.msra.mxu0 %v416_v6  ;;  %392 = vmatpush3.bf16.msra.mxu1 %v428_v17 }
   0xc   :  { %364 = vmatprep.subr.bf16.mxu0 %v417_v7  ;;  %393 = vmatprep.subr.bf16.mxu1 %v435_v1 }
   0xf   :  { %365 = vmatpush3.bf16.msra.mxu0 %v418_v8  ;;  %394 = vmatpush3.bf16.msra.mxu1 %v429_v20 }
  0x10   :  { %366 = vmatprep.subr.bf16.mxu0 %v419_v9  ;;  %395 = vmatprep.subr.bf16.mxu1 %v435_v1 }
  0x13   :  { %367 = vmatpush3.bf16.msra.mxu0 %v420_v10  ;;  %396 = vmatpush3.bf16.msra.mxu1 %v430_v23 }
  0x14   :  { %368 = vmatprep.subr.bf16.mxu0 %v421_v11  ;;  %397 = vmatprep.subr.bf16.mxu1 %v435_v1 }
  0x17   :  { %369 = vmatpush3.bf16.msra.mxu0 %v422_v15  ;;  %398 = vmatpush3.bf16.msra.mxu1 %v431_v25 }
  0x18   :  { %370 = vmatprep.subr.bf16.mxu0 %v423_v18  ;;  %399 = vmatprep.subr.bf16.mxu1 %v435_v1 }
  0x1b   :  { %371 = vmatpush3.bf16.msra.mxu0 %v424_v19  ;;  %400 = vmatpush3.bf16.msra.mxu1 %v432_v26 }
  0x1c   :  { %372 = vmatprep.subr.bf16.mxu0 %v425_v21  ;;  %401 = vmatprep.subr.bf16.mxu1 %v435_v1 }
  0x1f   :  { %373 = vmatpush3.bf16.msra.mxu0 %v426_v22  ;;  %402 = vmatpush3.bf16.msra.mxu1 %v433_v27 }
  0x20   :  { %403 = vmatprep.subr.bf16.mxu1 %v435_v1 }
  0x22   :  { %205 = vmatmul.mubr.bf16.vlgmr.msra.gmra.mrb[0].mxu0 %v35_v24 }
  0x23   :  { %404 = vmatpush3.bf16.msra.mxu1 %v434_v28 }
  0xf5   :  { %v374_v30 = vpop.f32.mrb[0].mxu0 }
  0xf6   :  { %v375_v32 = vpop.f32.mrb[1].mxu0 }
  0xf7   :  { %v376_v33 = vadd.f32 %v375_v32, %v374_v30  ;;  %v377_v34 = vpop.f32.mrb[2].mxu0 }
  0xf8   :  { %v378_v35 = vpop.f32.mrb[3].mxu0 }
  0xf9   :  { %v207_v36 = vadd.f32 %v376_v33, %v332_v31 }
  0xfb   :  { %v212_v37 = vmax.f32 %v207_v36, 0.0 }
  0xfd   :  { %v213_v38 = vpack.c.bf16 %v212_v37, %v212_v37 }
  0xff   :  { %406 = vmatmul.mubr.bf16.vlgmr.msra.gmra.mrb[0].mxu1 %v213_v38 }
 0x1d2   :  { %v319_v40 = vpop.f32.mrb[0].mxu1 }
 0x1d3   :  { %v320_v41 = vadd.f32 %v349_v39, %v319_v40  ;;  %v407_v42 = vpop.f32.mrb[1].mxu1 }
 0x1d4   :  { %v322_v43 = vpop.f32.mrb[2].mxu1 }
 0x1d5   :  { %326 = vst.msk [vmem:[%s565_s5] sm:$0x3] %vm325_vm1, %v320_v41  ;;  %v408_v44 = vpop.f32.mrb[3].mxu1 }

// kernel: trans_conv_forward.2
= control target key start
LH: loop header
LB: loop body
LE: loop exit
PB: predicated region body
PF: predicated region fallthrough
CT: control target
= control target key end

     0   :  { %12 = vsyncpa [#allocation4], 0  ;;  %s2975_s0 = inlined_call_operand.vmem [shape: bf16[16,128], index: 0, kind: input, shape index: {}]   ;;  %s2976_s1 = inlined_call_operand.hbm [shape: bf16[128,128], index: 1, kind: input, shape index: {}]   ;;  %s2977_s2 = inlined_call_operand.vmem [shape: f32[1,128], index: 2, kind: input, shape index: {}]   ;;  %s2978_s3 = inlined_call_operand.vmem [shape: bf16[2,16,16], index: 3, kind: input, shape index: {}]   ;;  %s2979_s4 = inlined_call_operand.hbm [shape: bf16[2,3,128,512], index: 4, kind: input, shape index: {}]   ;;  %s2980_s5 = inlined_call_operand.vmem [shape: f32[2,3,1,512], index: 5, kind: input, shape index: {}]   ;;  %s2981_s6 = inlined_call_operand.vmem [shape: bf16[2,16], index: 6, kind: input, shape index: {}]   ;;  %s2982_s7 = inlined_call_operand.vmem [shape: f32[2,256], index: 7, kind: output, shape index: {}]  }
   0x1   :  { %13 = vsyncpa [#allocation6], 0 }
   0x2   :  { %15 = vsyncpa [#allocation6 + $0x1], 0  ;;  %s2585_s24 = smov 0   ;;  %s2587_s25 = smov 0  }
   0x3   :  { %s2589_s26 = smov 0   ;;  %s2591_s27 = smov 0  }
   0x4 LB: > { %s2604_s28 = sadd.s32 4294967295, %s2533_s27   ;;  %p130_p0 = scmp.ne.s32.totalorder %s2525_s25, %s2521_s24  ;;  %s2533_s27 = sphi %s2591_s27, %s2997_s27   ;;  %s2529_s26 = sphi %s2589_s26, %s2996_s26   ;;  %s2525_s25 = sphi %s2587_s25, %s2995_s25   ;;  %s2521_s24 = sphi %s2585_s24, %s2994_s24  }
   0x5   : > { %p2983_p1 = scmp.eq.s32.totalorder %s2604_s28, 0  ;;  %p1921_p2 = scmp.ge.s32.totalorder %s2533_s27, 1 }
   0x6   : > { %p214_p3 = scmp.lt.s32.totalorder %s2533_s27, 3  ;;  %s2535_s8 = smov [#allocation3]  }
   0x7   : > { %p2612_p4 = por %p2983_p1, %p130_p0  ;;  %s229_s9 = sshll.u32 %s2535_s8, 4  ;;  %s230_s9 = int_to_ptr.vmem [resolvable:$true] %s229_s9 }
   0x8   : > { %p2616_p5 = pnand %p1921_p2, %p214_p3  ;;  %s2629_s11 = sadd.s32 1, %s2533_s27  }
   0x9   : > { %s2986_s29 = scalar_select %p2612_p4, 1, 0 }
   0xa   : > { %s2987_s30 = scalar_select %p2616_p5, 1, 0 }
   0xb   : > { %p2208_p6 = pneg %p2616_p5  ;;  %s117_s12 = sadd.s32 1, %s2529_s26 }
   0xc   : > { %s114_s13 = ssub.s32 %s2533_s27, %s2629_s11  ;;  %s2437_s16 = scalar_lea.hbm %s2976_s1, 1024 }
   0xd   : > { %p2624_p7 = pnand %p2208_p6, %p2983_p1  ;;  %p2438_p8 = scmp.ne.s32.totalorder %s2976_s1, %s2437_s16 }
   0xe   : > { %p2444_p12 = scmp.lt.u32.totalorder %s2437_s16, %s2976_s1 }
   0xf   : > { %p2439_p9 = pneg %p2624_p7 }
  0x11   : > { %p2440_p10 = pnand %p2439_p9, %p2438_p8 }
  0x13   : > { %p2441_p11 = pneg %p2440_p10 }
  0x15   : > { %p2446_p13 = pnand %p2444_p12, %p2441_p11 }
  0x17   : > { %2449 = shalt.err (!%p2446_p13)
}
  0x18   : > { %s2450_s21 = scalar_lea.vmem %s230_s9, 1024  ;;  %p2458_p6 = scmp.lt.s32.totalorder %s230_s9, %s230_s9 }
  0x19   : > { %p2451_p0 = scmp.ne.s32.totalorder %s230_s9, %s2450_s21  ;;  %p2459_p1 = scmp.lt.s32.totalorder %s2450_s21, %s2450_s21 }
  0x1b   : > { %p2453_p2 = pnand %p2451_p0, %p2439_p9  ;;  %p2460_p4 = por %p2459_p1, %p2458_p6 }
  0x1d   : > { %p2454_p3 = pneg %p2453_p2 }
  0x1f   : > { %p2461_p5 = pnand %p2460_p4, %p2454_p3 }
  0x21   : > { %2464 = shalt.err (!%p2461_p5)
}
  0x22   : > { %s2536_s22 = smov 64   ;;  %s2537_s23 = smov 4  }
  0x23   : > { %2211 = dma.hbm_to_vmem [thread:$0]  (!%p2624_p7), %s2976_s1, 1024, %s230_s9, [#allocation4], %s2536_s22, %s2536_s22, %s2537_s23  }
  0x24   : > { %p115_p8 = scmp.eq.s32.totalorder %s114_s13, 0  ;;  %p124_p9 = scmp.ne.s32.totalorder %s2529_s26, %s2525_s25 }
  0x25   : > { %p125_p1 = scmp.eq.s32.totalorder %s2533_s27, 0  ;;  %p2217_p4 = scmp.lt.s32.totalorder %s2533_s27, 2 }
  0x26   : > { %s2655_s14 = scalar_select %p115_p8, %s2529_s26, %s117_s12  }
  0x27   : > { %p126_p5 = por %p125_p1, %p124_p9  ;;  %s257_s15 = sand.u32 1, %s2529_s26  }
  0x28   : > { %s2198_s16 = smul.u32 768, %s257_s15  ;;  %s2470_s23 = scalar_lea.hbm %s2979_s4, 24576 }
  0x29   : > { %s2199_s17 = smul.u32 12288, %s2533_s27  ;;  %p2659_p10 = pnand %p2217_p4, %p126_p5 }
  0x2a   : > { %s261_s12 = scalar_lea.vmem [#allocation5], %s2198_s16  ;;  %s2670_s27 = scalar_lea.sflag [#allocation6], %s257_s15 }
  0x2b   : > { %s2666_s9 = scalar_lea.hbm %s2979_s4, %s2199_s17  ;;  %s268_s13 = sshll.u32 %s261_s12, 4  ;;  %s2668_s13 = int_to_ptr.vmem [resolvable:$true] %s268_s13 }
  0x2c   : > { %s2465_s20 = scalar_lea.hbm %s2666_s9, 12288  ;;  %p2467_p11 = pneg %p2659_p10 }
  0x2d   : > { %p2466_p7 = scmp.ne.s32.totalorder %s2666_s9, %s2465_s20  ;;  %p2471_p0 = scmp.lt.u32.totalorder %s2666_s9, %s2979_s4 }
  0x2e   : > { %p2472_p2 = scmp.lt.u32.totalorder %s2470_s23, %s2465_s20  ;;  %p2474_p6 = scmp.lt.u32.totalorder %s2465_s20, %s2666_s9 }
  0x2f   : > { %p2468_p12 = pnand %p2467_p11, %p2466_p7 }
  0x30   : > { %p2473_p3 = por %p2472_p2, %p2471_p0 }
  0x31   : > { %p2469_p13 = pneg %p2468_p12 }
  0x32   : > { %p2475_p8 = por %p2474_p6, %p2473_p3 }
  0x34   : > { %p2476_p9 = pnand %p2475_p8, %p2469_p13 }
  0x36   : > { %2479 = shalt.err (!%p2476_p9)
}
  0x37   : > { %s2480_s15 = scalar_lea.vmem %s2668_s13, 12288  ;;  %s2538_s16 = smov [#allocation5]  }
  0x38   : > { %p2481_p1 = scmp.ne.s32.totalorder %s2668_s13, %s2480_s15  ;;  %s2485_s17 = sshll.u32 %s2538_s16, 4  ;;  %s2486_s17 = int_to_ptr.vmem [resolvable:$false] %s2485_s17 }
  0x39   : > { %s2487_s19 = scalar_lea.vmem %s2486_s17, 24576  ;;  %p2488_p7 = scmp.lt.s32.totalorder %s2668_s13, %s2486_s17 }
  0x3a   : > { %p2483_p4 = pnand %p2481_p1, %p2467_p11  ;;  %p2489_p12 = scmp.lt.s32.totalorder %s2487_s19, %s2480_s15 }
  0x3c   : > { %p2484_p5 = pneg %p2483_p4  ;;  %p2490_p0 = por %p2489_p12, %p2488_p7 }
  0x3e   : > { %p2491_p2 = pnand %p2490_p0, %p2484_p5 }
  0x40   : > { %2494 = shalt.err (!%p2491_p2)
}
  0x41   : > { %s2539_s10 = smov 256   ;;  %s2540_s12 = smov 16  }
  0x42   : > { %2215 = dma.hbm_to_vmem [thread:$0]  (!%p2659_p10), %s2666_s9, 12288, %s2668_s13, %s2670_s27, %s2539_s10, %s2539_s10, %s2540_s12  }
  0x43   : > { %p2990_p11 = scmp.ne.s32.totalorder %s2987_s30, 0 }
  0x44   : > { %p2991_p13 = scmp.eq.s32.totalorder (!%p2990_p11), %s2604_s28, 0 }
  0x45   : > { %287 = sbr.rel (%p2990_p11) target bundleno = 3039 (0xbdf), region = 48 }
  0x4c   : > { %2512 = dma.done.wait (%p2991_p13), [#allocation4], 1024   ;;  %p2992_p3 = pmov %p2991_p13 }
  0x4d   : > { %s293_s20 = sand.u32 1, %s2525_s25   ;;  %p2993_p6 = scmp.ne.s32.totalorder %s2986_s29, 0 }
  0x4e   : > { %2514 = vsyncadd (%p2992_p3), [#allocation4], 4294966272  ;;  %s2200_s21 = smul.u32 768, %s293_s20  ;;  %s294_s22 = scalar_lea.sflag [#allocation6], %s293_s20 }
  0x50   : > { %s2705_s23 = scalar_lea.vmem [#allocation5], %s2200_s21 }
  0x51   : > { %2516 = dma.done.wait (%p2993_p6), %s294_s22, 12288  }
  0x52   : > { %2518 = vsyncadd (%p2993_p6), %s294_s22, 4294955008  ;;  %v2541_v0 = vmov 0.0   ;;  %vm2542_vm0 = vmmov 0   ;;  %v2260_v1 = vld [vmem:[#allocation3] sm:$0xff]   ;;  %v2261_v2 = vld [vmem:[#allocation3 + $0x8] sm:$0xff]   ;;  %v2543_v42 = vmov 0   ;;  %v519_v53 = vlaneseq }
  0x53   : > { %2136 = vmatprep.subr.bf16.mxu0 %v2541_v0  ;;  %2152 = vmatprep.mubr.msk.bf16.mxu0 %vm2542_vm0, %v2541_v0  ;;  %v2262_v3 = vld [vmem:[#allocation3 + $0x10] sm:$0xff]   ;;  %v2263_v5 = vld [vmem:[#allocation3 + $0x18] sm:$0xff]   ;;  %v2264_v8 = vld [vmem:[#allocation3 + $0x20] sm:$0xff]   ;;  %p336_p10 = scmp.lt.s32.totalorder %s2604_s28, 1  ;;  %vm832_vm3 = vcmask 130048  }
  0x54   : > { %2137 = vmatpush3.bf16.msra.mxu0 %v2260_v1  ;;  %v2269_v4 = vld [vmem:[%s2705_s23 + $0x4] ss:$16 sps:$4 sm:$0xff]   ;;  %v2274_v6 = vld [vmem:[%s2705_s23] ss:$16 sps:$4 sm:$0xff]   ;;  %v2265_v11 = vld [vmem:[#allocation3 + $0x28] sm:$0xff]   ;;  %731 = vmatprep.mubr.bf16.mxu1 %v2543_v42  ;;  %v2770_v54 = vshrl.u32 %v519_v53, 7 }
  0x55   : > { %2138 = vmatprep.subr.bf16.mxu0 %v2541_v0  ;;  %699 = vmatprep.subr.bf16.mxu1 %v2269_v4  ;;  %v2275_v7 = vld [vmem:[%s2705_s23 + $0x24] ss:$16 sps:$4 sm:$0xff]   ;;  %v2280_v9 = vld [vmem:[%s2705_s23 + $0x20] ss:$16 sps:$4 sm:$0xff]   ;;  %v2267_v17 = vld [vmem:[#allocation3 + $0x38] sm:$0xff]   ;;  %s2999_s28 = smov (!%p336_p10, %s2604_s28), 1 }
  0x56   : > { %700 = vmatpush1.bf16.msra.mxu1 %v2274_v6  ;;  %v2281_v10 = vld [vmem:[%s2705_s23 + $0x44] ss:$16 sps:$4 sm:$0xff]   ;;  %v2286_v12 = vld [vmem:[%s2705_s23 + $0x40] ss:$16 sps:$4 sm:$0xff]   ;;  %v2273_v19 = vld [vmem:[%s2705_s23 + $0xc] ss:$16 sps:$4 sm:$0xff]  }
  0x57   : > { %701 = vmatprep.subr.bf16.mxu1 %v2275_v7  ;;  %v2287_v13 = vld [vmem:[%s2705_s23 + $0x64] ss:$16 sps:$4 sm:$0xff]   ;;  %v2292_v15 = vld [vmem:[%s2705_s23 + $0x60] ss:$16 sps:$4 sm:$0xff]   ;;  %v2271_v23 = vld [vmem:[%s2705_s23 + $0x8] ss:$16 sps:$4 sm:$0xff]  }
  0x58   : > { %2139 = vmatpush3.bf16.msra.mxu0 %v2261_v2  ;;  %v2266_v14 = vld [vmem:[#allocation3 + $0x30] sm:$0xff]   ;;  %v2268_v21 = vld [vmem:[%s2975_s0] sm:$0xff]   ;;  %v2279_v24 = vld [vmem:[%s2705_s23 + $0x2c] ss:$16 sps:$4 sm:$0xff]   ;;  %s2201_s13 = smul.u32 12, %s2999_s28  ;;  %v2778_v55 = vsub.s32 0, %v2770_v54 }
  0x59   : > { %2140 = vmatprep.subr.bf16.mxu0 %v2541_v0  ;;  %v2293_v16 = vld [vmem:[%s2705_s23 + $0x84] ss:$16 sps:$4 sm:$0xff]   ;;  %v2298_v18 = vld [vmem:[%s2705_s23 + $0x80] ss:$16 sps:$4 sm:$0xff]   ;;  %v2277_v25 = vld [vmem:[%s2705_s23 + $0x28] ss:$16 sps:$4 sm:$0xff]  }
  0x5a   : > { %702 = vmatpush1.bf16.msra.mxu1 %v2280_v9  ;;  %v2299_v20 = vld [vmem:[%s2705_s23 + $0xa4] ss:$16 sps:$4 sm:$0xff]   ;;  %v2304_v22 = vld [vmem:[%s2705_s23 + $0xa0] ss:$16 sps:$4 sm:$0xff]   ;;  %v2285_v26 = vld [vmem:[%s2705_s23 + $0x4c] ss:$16 sps:$4 sm:$0xff]   ;;  %s2775_s8 = scalar_lea.vmem %s2980_s5, %s2201_s13 }
  0x5b   : > { %703 = vmatprep.subr.bf16.mxu1 %v2281_v10  ;;  %v2283_v27 = vld [vmem:[%s2705_s23 + $0x48] ss:$16 sps:$4 sm:$0xff]   ;;  %v2291_v28 = vld [vmem:[%s2705_s23 + $0x6c] ss:$16 sps:$4 sm:$0xff]   ;;  %v2305_v34 = vld [vmem:[%s2705_s23 + $0xc4] ss:$16 sps:$4 sm:$0xff]  }
  0x5c   : > { %2141 = vmatpush3.bf16.msra.mxu0 %v2262_v3  ;;  %v2289_v29 = vld [vmem:[%s2705_s23 + $0x68] ss:$16 sps:$4 sm:$0xff]   ;;  %v2297_v30 = vld [vmem:[%s2705_s23 + $0x8c] ss:$16 sps:$4 sm:$0xff]   ;;  %v2310_v37 = vld [vmem:[%s2705_s23 + $0xc0] ss:$16 sps:$4 sm:$0xff]  }
  0x5d   : > { %2142 = vmatprep.subr.bf16.mxu0 %v2541_v0  ;;  %v2295_v31 = vld [vmem:[%s2705_s23 + $0x88] ss:$16 sps:$4 sm:$0xff]   ;;  %v2303_v32 = vld [vmem:[%s2705_s23 + $0xac] ss:$16 sps:$4 sm:$0xff]   ;;  %v2311_v38 = vld [vmem:[%s2705_s23 + $0xe4] ss:$16 sps:$4 sm:$0xff]  }
  0x5e   : > { %704 = vmatpush1.bf16.msra.mxu1 %v2286_v12  ;;  %v2301_v33 = vld [vmem:[%s2705_s23 + $0xa8] ss:$16 sps:$4 sm:$0xff]   ;;  %v2309_v35 = vld [vmem:[%s2705_s23 + $0xcc] ss:$16 sps:$4 sm:$0xff]   ;;  %v2316_v41 = vld [vmem:[%s2705_s23 + $0xe0] ss:$16 sps:$4 sm:$0xff]  }
  0x5f   : > { %705 = vmatprep.subr.bf16.mxu1 %v2287_v13  ;;  %v2307_v36 = vld [vmem:[%s2705_s23 + $0xc8] ss:$16 sps:$4 sm:$0xff]   ;;  %v2315_v39 = vld [vmem:[%s2705_s23 + $0xec] ss:$16 sps:$4 sm:$0xff]   ;;  %v1930_v43 = vld [vmem:[%s2977_s2] ss:$0 sm:$0xff] }
  0x60   : > { %2143 = vmatpush3.bf16.msra.mxu0 %v2263_v5  ;;  %v2313_v40 = vld [vmem:[%s2705_s23 + $0xe8] ss:$16 sps:$4 sm:$0xff]   ;;  %v2781_v56 = vsub.s32 2, %v2770_v54  ;;  %v2784_v57 = vld [vmem:[%s2775_s8] sm:$0xf]  ;;  %v2787_v58 = vsub.s32 1, %v2770_v54 }
  0x61   : > { %2144 = vmatprep.subr.bf16.mxu0 %v2541_v0  ;;  %v522_v59 = vrot.slane %v2784_v57, %v2778_v55  ;;  %s2108_s15 = sshll.u32 %s2999_s28, 3  ;;  %v2326_v53 = vld [vmem:[%s2705_s23 + $0x128] ss:$16 sps:$4 sm:$0xff]   ;;  %s1929_s20 = sshll.u32 %s2999_s28, 1 }
  0x62   : > { %706 = vmatpush1.bf16.msra.mxu1 %v2292_v15  ;;  %v530_v60 = vrot.slane %v2784_v57, %v2781_v56  ;;  %v526_v63 = vrot.slane %v2784_v57, %v2787_v58  ;;  %s340_s19 = scalar_lea.vmem %s2978_s3, %s2108_s15 }
  0x63   : > { %707 = vmatprep.subr.bf16.mxu1 %v2293_v16  ;;  %v2110_v16 = vld [vmem:[%s340_s19] sm:$0xff]  }
  0x64   : > { %2145 = vmatpush3.bf16.msra.mxu0 %v2264_v8 }
  0x65   : > { %2146 = vmatprep.subr.bf16.mxu0 %v2541_v0 }
  0x66   : > { %708 = vmatpush1.bf16.msra.mxu1 %v2298_v18  ;;  %v2808_v18 = vunpack.c.h.bf16 %v2110_v16 }
  0x67   : > { %709 = vmatprep.subr.bf16.mxu1 %v2299_v20  ;;  %v2544_v20 = vmov -1e+30  }
  0x68   : > { %2147 = vmatpush3.bf16.msra.mxu0 %v2265_v11  ;;  %vm479_vm2 = vcmp.gt.f32.partialorder %v2808_v18, 0.0 }
  0x69   : > { %2148 = vmatprep.subr.bf16.mxu0 %v2541_v0 }
  0x6a   : > { %710 = vmatpush1.bf16.msra.mxu1 %v2304_v22 }
  0x6b   : > { %711 = vmatprep.subr.bf16.mxu1 %v2305_v34 }
  0x6c   : > { %2149 = vmatpush3.bf16.msra.mxu0 %v2266_v14 }
  0x6d   : > { %2150 = vmatprep.subr.bf16.mxu0 %v2541_v0 }
  0x6e   : > { %712 = vmatpush1.bf16.msra.mxu1 %v2310_v37 }
  0x6f   : > { %713 = vmatprep.subr.bf16.mxu1 %v2311_v38 }
  0x70   : > { %2151 = vmatpush3.bf16.msra.mxu0 %v2267_v17  ;;  %v2806_v17 = vunpack.c.l.bf16 %v2110_v16  ;;  %v2353_v16 = vld [vmem:[%s2705_s23 + $0x1c0] ss:$16 sps:$4 sm:$0xff]  }
  0x71   : > { %742 = vmatprep.subr.bf16.mxu0 %v2273_v19 }
  0x72   : > { %714 = vmatpush1.bf16.msra.mxu1 %v2316_v41  ;;  %vm478_vm1 = vcmp.gt.f32.partialorder %v2806_v17, 0.0 }
  0x73   : > { %2153 = vmatmul.mubr.bf16.vlgmr.msra.gmra.mrb[0].mxu0 %v2268_v21  ;;  %2156 = vmatprep.subr.bf16.mxu1 %v2541_v0  ;;  %v2812_v21 = vsel %vm478_vm1, 0.0, %v2544_v20 }
  0x74   : > { %743 = vmatpush1.bf16.msra.mxu0 %v2271_v23  ;;  %774 = vmatprep.mubr.bf16.mxu0 %v2543_v42 }
  0x75   : > { %744 = vmatprep.subr.bf16.mxu0 %v2279_v24 }
  0x78   : > { %745 = vmatpush1.bf16.msra.mxu0 %v2277_v25  ;;  %v2814_v25 = vsel %vm479_vm2, 0.0, %v2544_v20  ;;  %v2361_v20 = vld [vmem:[%s2705_s23 + $0x1e4] ss:$16 sps:$4 sm:$0xff]  }
  0x79   : > { %746 = vmatprep.subr.bf16.mxu0 %v2285_v26 }
  0x7c   : > { %747 = vmatpush1.bf16.msra.mxu0 %v2283_v27 }
  0x7d   : > { %748 = vmatprep.subr.bf16.mxu0 %v2291_v28 }
  0x80   : > { %749 = vmatpush1.bf16.msra.mxu0 %v2289_v29 }
  0x81   : > { %750 = vmatprep.subr.bf16.mxu0 %v2297_v30 }
  0x84   : > { %751 = vmatpush1.bf16.msra.mxu0 %v2295_v31 }
  0x85   : > { %752 = vmatprep.subr.bf16.mxu0 %v2303_v32 }
  0x88   : > { %753 = vmatpush1.bf16.msra.mxu0 %v2301_v33 }
  0x89   : > { %754 = vmatprep.subr.bf16.mxu0 %v2309_v35 }
  0x8c   : > { %755 = vmatpush1.bf16.msra.mxu0 %v2307_v36 }
  0x8d   : > { %756 = vmatprep.subr.bf16.mxu0 %v2315_v39 }
  0x90   : > { %757 = vmatpush1.bf16.msra.mxu0 %v2313_v40 }
 0x146   : > { %v463_v44 = vpop.f32.mrb[0].mxu0 }
 0x147   : > { %v464_v45 = vadd.f32 %v1930_v43, %v463_v44  ;;  %v2154_v46 = vpop.f32.mrb[1].mxu0 }
 0x148   : > { %v466_v47 = vpop.f32.mrb[2].mxu0  ;;  %v2317_v46 = vld [vmem:[%s2705_s23 + $0x100] ss:$16 sps:$4 sm:$0xff]  }
 0x149   : > { %v467_v48 = vadd.f32 %v1930_v43, %v466_v47  ;;  %v2155_v49 = vpop.f32.mrb[3].mxu0  ;;  %v470_v50 = vmax.f32 %v464_v45, 0.0  ;;  %v2319_v47 = vld [vmem:[%s2705_s23 + $0x104] ss:$16 sps:$4 sm:$0xff]  }
 0x14a   : > { %v2322_v49 = vld [vmem:[%s2705_s23 + $0x10c] ss:$16 sps:$4 sm:$0xff]  }
 0x14b   : > { %v471_v51 = vmax.f32 %v467_v48, 0.0  ;;  %v2320_v48 = vld [vmem:[%s2705_s23 + $0x108] ss:$16 sps:$4 sm:$0xff]   ;;  %1173 = vmatprep.subr.bf16.mxu0 %v2322_v49 }
 0x14d   : > { %v517_v52 = vpack.c.bf16 %v471_v51, %v470_v50  ;;  %v2325_v50 = vld [vmem:[%s2705_s23 + $0x124] ss:$16 sps:$4 sm:$0xff]   ;;  %v2328_v51 = vld [vmem:[%s2705_s23 + $0x12c] ss:$16 sps:$4 sm:$0xff]  }
 0x14f   : > { %732 = vmatmul.mubr.bf16.vlgmr.msra.gmra.mrb[0].mxu1 %v517_v52  ;;  %775 = vmatmul.mubr.bf16.vlgmr.msra.gmra.mrb[4].mxu0 %v517_v52  ;;  %v2323_v52 = vld [vmem:[%s2705_s23 + $0x120] ss:$16 sps:$4 sm:$0xff]  }
 0x150   : > { %2158 = vmatprep.mubr.msk.bf16.mxu1 %vm2542_vm0, %v2541_v0  ;;  %1205 = vmatprep.mubr.bf16.mxu0 %v2543_v42 }
 0x151   : > { %1174 = vmatpush1.bf16.msra.mxu0 %v2320_v48 }
 0x152   : > { %1175 = vmatprep.subr.bf16.mxu0 %v2328_v51 }
 0x155   : > { %1176 = vmatpush1.bf16.msra.mxu0 %v2326_v53 }
 0x222   : > { %v733_v61 = vpop.f32.mrb[0].mxu1  ;;  %v776_v62 = vpop.f32.mrb[4].mxu0 }
 0x223   : > { %v735_v1 = vpop.f32.mrb[1].mxu1  ;;  %v2795_v2 = vpop.f32.mrb[5].mxu0  ;;  %v734_v5 = vadd.f32 %v733_v61, %v522_v59  ;;  %v777_v6 = vadd.f32 %v776_v62, %v530_v60  ;;  %v2329_v61 = vld [vmem:[%s2705_s23 + $0x140] ss:$16 sps:$4 sm:$0xff]   ;;  %v2332_v62 = vld [vmem:[%s2705_s23 + $0x148] ss:$16 sps:$4 sm:$0xff]  }
 0x224   : > { %v737_v3 = vpop.f32.mrb[2].mxu1  ;;  %v780_v4 = vpop.f32.mrb[6].mxu0  ;;  %v736_v11 = vadd.f32 %v735_v1, %v526_v63  ;;  %v2340_v1 = vld [vmem:[%s2705_s23 + $0x16c] ss:$16 sps:$4 sm:$0xff]  }
 0x225   : > { %v738_v7 = vadd.f32 %v737_v3, %v522_v59  ;;  %v781_v8 = vadd.f32 %v780_v4, %v530_v60  ;;  %v739_v9 = vpop.f32.mrb[3].mxu1  ;;  %v2797_v10 = vpop.f32.mrb[7].mxu0  ;;  %v2331_v59 = vld [vmem:[%s2705_s23 + $0x144] ss:$16 sps:$4 sm:$0xff]   ;;  %v2334_v60 = vld [vmem:[%s2705_s23 + $0x14c] ss:$16 sps:$4 sm:$0xff]  }
 0x226   : > { %v740_v12 = vadd.f32 %v739_v9, %v526_v63  ;;  %v2337_v63 = vld [vmem:[%s2705_s23 + $0x164] ss:$16 sps:$4 sm:$0xff]   ;;  %1177 = vmatprep.subr.bf16.mxu0 %v2334_v60  ;;  %v2335_v3 = vld [vmem:[%s2705_s23 + $0x160] ss:$16 sps:$4 sm:$0xff]   ;;  %v2338_v4 = vld [vmem:[%s2705_s23 + $0x168] ss:$16 sps:$4 sm:$0xff]  }
 0x227   : > { %v785_v13 = vpack.c.bf16 %v738_v7, %v734_v5  ;;  %v858_v14 = vpack.c.bf16 %v781_v8, %v777_v6  ;;  %1178 = vmatpush1.bf16.msra.mxu0 %v2332_v62  ;;  %v2343_v5 = vld [vmem:[%s2705_s23 + $0x184] ss:$16 sps:$4 sm:$0xff]   ;;  %v2346_v6 = vld [vmem:[%s2705_s23 + $0x18c] ss:$16 sps:$4 sm:$0xff]   ;;  %v2341_v7 = vld [vmem:[%s2705_s23 + $0x180] ss:$16 sps:$4 sm:$0xff]  }
 0x228   : > { %v786_v15 = vpack.c.bf16 %v740_v12, %v736_v11  ;;  %1179 = vmatprep.subr.bf16.mxu0 %v2340_v1  ;;  %v2344_v8 = vld [vmem:[%s2705_s23 + $0x188] ss:$16 sps:$4 sm:$0xff]   ;;  %v2349_v9 = vld [vmem:[%s2705_s23 + $0x1a4] ss:$16 sps:$4 sm:$0xff]   ;;  %v2352_v11 = vld [vmem:[%s2705_s23 + $0x1ac] ss:$16 sps:$4 sm:$0xff]  }
 0x229   : > { %v2347_v12 = vld [vmem:[%s2705_s23 + $0x1a0] ss:$16 sps:$4 sm:$0xff]  }
 0x22a   : > { %2157 = vmatpush3.bf16.xpose.msra.mxu1 %v786_v15  ;;  %v2358_v15 = vld [vmem:[%s2705_s23 + $0x1cc] ss:$16 sps:$4 sm:$0xff]  }
 0x22b   : > { %2162 = vmatprep.subr.bf16.mxu1 %v2541_v0  ;;  %1180 = vmatpush1.bf16.msra.mxu0 %v2338_v4 }
 0x22c   : > { %1181 = vmatprep.subr.bf16.mxu0 %v2346_v6 }
 0x22f   : > { %1182 = vmatpush1.bf16.msra.mxu0 %v2344_v8 }
 0x230   : > { %1183 = vmatprep.subr.bf16.mxu0 %v2352_v11 }
 0x231   : > { %2159 = vmatmul.mubr.bf16.vlgmr.msra.gmra.mrb[4].mxu1 %v785_v13  ;;  %v2350_v13 = vld [vmem:[%s2705_s23 + $0x1a8] ss:$16 sps:$4 sm:$0xff]  }
 0x232   : > { %2163 = vmatpush3.bf16.msra.mxu1 %v858_v14  ;;  %2164 = vmatprep.mubr.msk.bf16.mxu1 %vm2542_vm0, %v2541_v0  ;;  %v2355_v14 = vld [vmem:[%s2705_s23 + $0x1c4] ss:$16 sps:$4 sm:$0xff]  }
 0x233   : > { %1130 = vmatprep.subr.bf16.mxu1 %v2319_v47  ;;  %1184 = vmatpush1.bf16.msra.mxu0 %v2350_v13 }
 0x234   : > { %1185 = vmatprep.subr.bf16.mxu0 %v2358_v15 }
 0x304   : > { %v821_v19 = vpop.f32.mrb[4].mxu1 }
 0x305   : > { %v828_v22 = vmul.f32 0.088388346, %v821_v19  ;;  %v2160_v23 = vpop.f32.mrb[5].mxu1  ;;  %v2356_v19 = vld [vmem:[%s2705_s23 + $0x1c8] ss:$16 sps:$4 sm:$0xff]  }
 0x306   : > { %v824_v24 = vpop.f32.mrb[6].mxu1  ;;  %1186 = vmatpush1.bf16.msra.mxu0 %v2356_v19  ;;  %v2359_v23 = vld [vmem:[%s2705_s23 + $0x1e0] ss:$16 sps:$4 sm:$0xff]  }
 0x307   : > { %v829_v26 = vmul.f32 0.088388346, %v824_v24  ;;  %v2161_v27 = vpop.f32.mrb[7].mxu1  ;;  %v830_v28 = vadd.f32 %v828_v22, %v2812_v21  ;;  %v2364_v22 = vld [vmem:[%s2705_s23 + $0x1ec] ss:$16 sps:$4 sm:$0xff]  }
 0x308   : > { %v2362_v24 = vld [vmem:[%s2705_s23 + $0x1e8] ss:$16 sps:$4 sm:$0xff]   ;;  %1187 = vmatprep.subr.bf16.mxu0 %v2364_v22 }
 0x309   : > { %v833_v29 = vsel %vm832_vm3, %v830_v28, -inf  ;;  %v831_v30 = vadd.f32 %v829_v26, %v2814_v25 }
 0x30a   : > { %834 = vmax.xlane.f32.xlu0 %v833_v29  ;;  %1188 = vmatpush1.bf16.msra.mxu0 %v2362_v24 }
 0x30b   : > { %v836_v31 = vsel %vm832_vm3, %v831_v30, -inf }
 0x30e   : > { %837 = vmax.xlane.f32.xlu0 %v836_v31 }
 0x397   : > { %v835_v32 = vpop.xlane.xlu0 %834 }
 0x398   : > { %v839_v33 = vsub.f32 %v830_v28, %v835_v32 }
 0x39a   : > { %v841_v34 = vmul.f32 1.442695, %v839_v33 }
 0x39b   : > { %v838_v35 = vpop.xlane.xlu0 %837 }
 0x39c   : > { %2413 = vpow2.f32 %v841_v34  ;;  %v840_v36 = vsub.f32 %v831_v30, %v838_v35  ;;  %v2860_v30 = vsub.s32 3, %v2770_v54 }
 0x39e   : > { %v843_v37 = vmul.f32 1.442695, %v840_v36  ;;  %v534_v31 = vrot.slane %v2784_v57, %v2860_v30  ;;  %v2870_v57 = vld [vmem:[%s2775_s8 + $0x4] sm:$0xf] }
 0x39f   : > { %v957_v49 = vrot.slane %v2870_v57, %v2787_v58 }
 0x3a0   : > { %2415 = vpow2.f32 %v843_v37  ;;  %v779_v34 = vadd.f32 %v2795_v2, %v534_v31  ;;  %v953_v2 = vrot.slane %v2870_v57, %v2778_v55 }
 0x3a6   : > { %v2414_v38 = vpop.eup %2413 }
 0x3a7   : > { %v845_v39 = vmul.f32 %v2414_v38, %v2806_v17 }
 0x3a9   : > { %v847_v40 = vsel %vm832_vm3, %v845_v39, 0.0 }
 0x3aa   : > { %v2416_v41 = vpop.eup %2415  ;;  %848 = vadd.xlane.f32.xlu1 %v847_v40 }
 0x3ab   : > { %v846_v43 = vmul.f32 %v2416_v41, %v2808_v18 }
 0x3ad   : > { %v850_v44 = vsel %vm832_vm3, %v846_v43, 0.0  ;;  %v857_v45 = vpack.c.bf16 %v846_v43, %v845_v39  ;;  %v783_v39 = vadd.f32 %v2797_v10, %v534_v31  ;;  %v961_v10 = vrot.slane %v2870_v57, %v2781_v56 }
 0x3ae   : > { %851 = vadd.xlane.f32.xlu1 %v850_v44 }
 0x3af   : > { %2165 = vmatmul.mubr.msk.bf16.vlgmr.msra.gmra.mrb[8].mxu1 %vm832_vm3, %v857_v45 }
 0x3b0   : > { %1162 = vmatprep.mubr.bf16.mxu1 %v2543_v42  ;;  %1131 = vmatpush1.bf16.msra.mxu1 %v2317_v46 }
 0x3b1   : > { %1132 = vmatprep.subr.bf16.mxu1 %v2325_v50 }
 0x3b4   : > { %1133 = vmatpush1.bf16.msra.mxu1 %v2323_v52 }
 0x3b5   : > { %1134 = vmatprep.subr.bf16.mxu1 %v2331_v59 }
 0x3b8   : > { %1135 = vmatpush1.bf16.msra.mxu1 %v2329_v61 }
 0x3b9   : > { %1136 = vmatprep.subr.bf16.mxu1 %v2337_v63 }
 0x3bc   : > { %1137 = vmatpush1.bf16.msra.mxu1 %v2335_v3 }
 0x3bd   : > { %1138 = vmatprep.subr.bf16.mxu1 %v2343_v5 }
 0x3c0   : > { %1139 = vmatpush1.bf16.msra.mxu1 %v2341_v7 }
 0x3c1   : > { %1140 = vmatprep.subr.bf16.mxu1 %v2349_v9 }
 0x3c4   : > { %1141 = vmatpush1.bf16.msra.mxu1 %v2347_v12 }
 0x3c5   : > { %1142 = vmatprep.subr.bf16.mxu1 %v2355_v14 }
 0x3c8   : > { %1143 = vmatpush1.bf16.msra.mxu1 %v2353_v16 }
 0x3c9   : > { %1144 = vmatprep.subr.bf16.mxu1 %v2361_v20 }
 0x3cc   : > { %1145 = vmatpush1.bf16.msra.mxu1 %v2359_v23 }
 0x3cd   : > { %2168 = vmatprep.subr.bf16.mxu1 %v2541_v0 }
 0x437   : > { %v849_v26 = vpop.xlane.xlu1 %848 }
 0x438   : > { %v853_v28 = vadd.f32 1e-30, %v849_v26 }
 0x43a   : > { %2417 = vrcp.f32 %v853_v28 }
 0x43b   : > { %v852_v27 = vpop.xlane.xlu1 %851 }
 0x43c   : > { %v854_v29 = vadd.f32 1e-30, %v852_v27 }
 0x43e   : > { %2419 = vrcp.f32 %v854_v29 }
 0x444   : > { %v2418_v32 = vpop.eup %2417 }
 0x448   : > { %v2420_v37 = vpop.eup %2419 }
 0x482   : > { %v896_v33 = vpop.f32.mrb[8].mxu1 }
 0x483   : > { %v903_v35 = vmul.f32 %v2418_v32, %v896_v33  ;;  %v2166_v36 = vpop.f32.mrb[9].mxu1 }
 0x484   : > { %v899_v38 = vpop.f32.mrb[10].mxu1 }
 0x485   : > { %v905_v40 = vadd.f32 %v903_v35, %v779_v34  ;;  %v904_v41 = vmul.f32 %v2420_v37, %v899_v38  ;;  %v2167_v43 = vpop.f32.mrb[11].mxu1  ;;  %v2365_v37 = vld [vmem:[%s2705_s23 + $0x200] ss:$16 sps:$4 sm:$0xff]   ;;  %v2367_v38 = vld [vmem:[%s2705_s23 + $0x204] ss:$16 sps:$4 sm:$0xff]  }
 0x486   : > { %1560 = vmatprep.subr.bf16.mxu0 %v2367_v38  ;;  %v2376_v43 = vld [vmem:[%s2705_s23 + $0x22c] ss:$16 sps:$4 sm:$0xff]  }
 0x487   : > { %v906_v44 = vadd.f32 %v904_v41, %v783_v39  ;;  %v907_v54 = vmax.f32 %v905_v40, 0.0  ;;  %v2368_v39 = vld [vmem:[%s2705_s23 + $0x208] ss:$16 sps:$4 sm:$0xff]   ;;  %v2370_v40 = vld [vmem:[%s2705_s23 + $0x20c] ss:$16 sps:$4 sm:$0xff]  }
 0x488   : > { %v2373_v41 = vld [vmem:[%s2705_s23 + $0x224] ss:$16 sps:$4 sm:$0xff]  }
 0x489   : > { %v908_v45 = vmax.f32 %v906_v44, 0.0  ;;  %v2371_v44 = vld [vmem:[%s2705_s23 + $0x220] ss:$16 sps:$4 sm:$0xff]  }
 0x48b   : > { %v948_v46 = vpack.c.bf16 %v908_v45, %v907_v54  ;;  %v2374_v54 = vld [vmem:[%s2705_s23 + $0x228] ss:$16 sps:$4 sm:$0xff]   ;;  %v2382_v45 = vld [vmem:[%s2705_s23 + $0x24c] ss:$16 sps:$4 sm:$0xff]  }
 0x48d   : > { %1163 = vmatmul.mubr.bf16.vlgmr.msra.gmra.mrb[12].mxu1 %v948_v46  ;;  %1206 = vmatmul.mubr.bf16.vlgmr.msra.gmra.mrb[8].mxu0 %v948_v46  ;;  %v2377_v46 = vld [vmem:[%s2705_s23 + $0x240] ss:$16 sps:$4 sm:$0xff]  }
 0x48e   : > { %2170 = vmatprep.mubr.msk.bf16.mxu1 %vm2542_vm0, %v2541_v0  ;;  %1592 = vmatprep.mubr.bf16.mxu0 %v2543_v42 }
 0x48f   : > { %1561 = vmatpush1.bf16.msra.mxu0 %v2365_v37 }
 0x490   : > { %1562 = vmatprep.subr.bf16.mxu0 %v2373_v41 }
 0x493   : > { %1563 = vmatpush1.bf16.msra.mxu0 %v2371_v44 }
 0x560   : > { %v1164_v47 = vpop.f32.mrb[12].mxu1  ;;  %v1207_v48 = vpop.f32.mrb[8].mxu0 }
 0x561   : > { %v1166_v50 = vpop.f32.mrb[13].mxu1  ;;  %v2878_v51 = vpop.f32.mrb[9].mxu0  ;;  %v1165_v59 = vadd.f32 %v1164_v47, %v953_v2  ;;  %v1208_v60 = vadd.f32 %v1207_v48, %v961_v10  ;;  %v2388_v47 = vld [vmem:[%s2705_s23 + $0x26c] ss:$16 sps:$4 sm:$0xff]   ;;  %v2383_v48 = vld [vmem:[%s2705_s23 + $0x260] ss:$16 sps:$4 sm:$0xff]  }
 0x562   : > { %v1168_v52 = vpop.f32.mrb[14].mxu1  ;;  %v1211_v53 = vpop.f32.mrb[10].mxu0  ;;  %v1167_v3 = vadd.f32 %v1166_v50, %v957_v49  ;;  %v2391_v50 = vld [vmem:[%s2705_s23 + $0x284] ss:$16 sps:$4 sm:$0xff]  }
 0x563   : > { %v1169_v61 = vadd.f32 %v1168_v52, %v953_v2  ;;  %v1212_v62 = vadd.f32 %v1211_v53, %v961_v10  ;;  %v1170_v63 = vpop.f32.mrb[15].mxu1  ;;  %v2880_v1 = vpop.f32.mrb[11].mxu0  ;;  %v2380_v2 = vld [vmem:[%s2705_s23 + $0x248] ss:$16 sps:$4 sm:$0xff]   ;;  %v2385_v10 = vld [vmem:[%s2705_s23 + $0x264] ss:$16 sps:$4 sm:$0xff]  }
 0x564   : > { %v1171_v4 = vadd.f32 %v1170_v63, %v957_v49  ;;  %v2386_v49 = vld [vmem:[%s2705_s23 + $0x268] ss:$16 sps:$4 sm:$0xff]   ;;  %v2394_v52 = vld [vmem:[%s2705_s23 + $0x28c] ss:$16 sps:$4 sm:$0xff]   ;;  %v2389_v53 = vld [vmem:[%s2705_s23 + $0x280] ss:$16 sps:$4 sm:$0xff]  }
 0x565   : > { %v1216_v5 = vpack.c.bf16 %v1169_v61, %v1165_v59  ;;  %v1288_v6 = vpack.c.bf16 %v1212_v62, %v1208_v60  ;;  %v2392_v59 = vld [vmem:[%s2705_s23 + $0x288] ss:$16 sps:$4 sm:$0xff]   ;;  %v2397_v60 = vld [vmem:[%s2705_s23 + $0x2a4] ss:$16 sps:$4 sm:$0xff]   ;;  %v2400_v61 = vld [vmem:[%s2705_s23 + $0x2ac] ss:$16 sps:$4 sm:$0xff]  }
 0x566   : > { %v1217_v7 = vpack.c.bf16 %v1171_v4, %v1167_v3  ;;  %v2395_v62 = vld [vmem:[%s2705_s23 + $0x2a0] ss:$16 sps:$4 sm:$0xff]   ;;  %v2398_v63 = vld [vmem:[%s2705_s23 + $0x2a8] ss:$16 sps:$4 sm:$0xff]   ;;  %v2403_v3 = vld [vmem:[%s2705_s23 + $0x2c4] ss:$16 sps:$4 sm:$0xff]  }
 0x567   : > { %v2406_v4 = vld [vmem:[%s2705_s23 + $0x2cc] ss:$16 sps:$4 sm:$0xff]  }
 0x568   : > { %2169 = vmatpush3.bf16.xpose.msra.mxu1 %v1217_v7  ;;  %v2409_v7 = vld [vmem:[%s2705_s23 + $0x2e4] ss:$16 sps:$4 sm:$0xff]  }
 0x569   : > { %2174 = vmatprep.subr.bf16.mxu1 %v2541_v0 }
 0x56f   : > { %2171 = vmatmul.mubr.bf16.vlgmr.msra.gmra.mrb[16].mxu1 %v1216_v5  ;;  %v2401_v5 = vld [vmem:[%s2705_s23 + $0x2c0] ss:$16 sps:$4 sm:$0xff]  }
 0x570   : > { %2175 = vmatpush3.bf16.msra.mxu1 %v1288_v6  ;;  %2176 = vmatprep.mubr.msk.bf16.mxu1 %vm2542_vm0, %v2541_v0  ;;  %v2404_v6 = vld [vmem:[%s2705_s23 + $0x2c8] ss:$16 sps:$4 sm:$0xff]  }
 0x571   : > { %1603 = vmatprep.subr.bf16.mxu1 %v2370_v40 }
 0x642   : > { %v1252_v8 = vpop.f32.mrb[16].mxu1 }
 0x643   : > { %v1259_v9 = vmul.f32 0.088388346, %v1252_v8  ;;  %v2172_v11 = vpop.f32.mrb[17].mxu1  ;;  %v2412_v8 = vld [vmem:[%s2705_s23 + $0x2ec] ss:$16 sps:$4 sm:$0xff]  }
 0x644   : > { %v1255_v12 = vpop.f32.mrb[18].mxu1  ;;  %v2410_v11 = vld [vmem:[%s2705_s23 + $0x2e8] ss:$16 sps:$4 sm:$0xff]  }
 0x645   : > { %v1260_v13 = vmul.f32 0.088388346, %v1255_v12  ;;  %v2173_v14 = vpop.f32.mrb[19].mxu1  ;;  %v1261_v15 = vadd.f32 %v1259_v9, %v2812_v21  ;;  %v2407_v9 = vld [vmem:[%s2705_s23 + $0x2e0] ss:$16 sps:$4 sm:$0xff]  }
 0x647   : > { %v1263_v16 = vsel %vm832_vm3, %v1261_v15, -inf  ;;  %v1262_v19 = vadd.f32 %v1260_v13, %v2814_v25 }
 0x648   : > { %1264 = vmax.xlane.f32.xlu0 %v1263_v16  ;;  %v965_v16 = vrot.slane %v2870_v57, %v2860_v30  ;;  %v2071_v57 = vld [vmem:[%s2775_s8 + $0x8] sm:$0xf] }
 0x649   : > { %v1266_v20 = vsel %vm832_vm3, %v1262_v19, -inf }
 0x64a   : > { %1267 = vmax.xlane.f32.xlu1 %v1266_v20 }
 0x6d5   : > { %v1265_v22 = vpop.xlane.xlu0 %1264 }
 0x6d6   : > { %v1269_v23 = vsub.f32 %v1261_v15, %v1265_v22  ;;  %v1210_v22 = vadd.f32 %v2878_v51, %v965_v16  ;;  %v1383_v51 = vrot.slane %v2071_v57, %v2778_v55 }
 0x6d7   : > { %v1268_v24 = vpop.xlane.xlu1 %1267 }
 0x6d8   : > { %v1271_v26 = vmul.f32 1.442695, %v1269_v23  ;;  %v1270_v27 = vsub.f32 %v1262_v19, %v1268_v24 }
 0x6da   : > { %2421 = vpow2.f32 %v1271_v26  ;;  %v1273_v28 = vmul.f32 1.442695, %v1270_v27 }
 0x6dc   : > { %2423 = vpow2.f32 %v1273_v28  ;;  %v1214_v28 = vadd.f32 %v2880_v1, %v965_v16  ;;  %v1391_v1 = vrot.slane %v2071_v57, %v2781_v56 }
 0x6e4   : > { %v2422_v29 = vpop.eup %2421 }
 0x6e5   : > { %v1275_v31 = vmul.f32 %v2422_v29, %v2806_v17 }
 0x6e6   : > { %v2424_v32 = vpop.eup %2423 }
 0x6e7   : > { %v1277_v33 = vsel %vm832_vm3, %v1275_v31, 0.0  ;;  %v1276_v34 = vmul.f32 %v2424_v32, %v2808_v18 }
 0x6e8   : > { %1278 = vadd.xlane.f32.xlu0 %v1277_v33 }
 0x6e9   : > { %v1280_v35 = vsel %vm832_vm3, %v1276_v34, 0.0  ;;  %v1287_v36 = vpack.c.bf16 %v1276_v34, %v1275_v31 }
 0x6ea   : > { %1281 = vadd.xlane.f32.xlu1 %v1280_v35 }
 0x6eb   : > { %2177 = vmatmul.mubr.msk.bf16.vlgmr.msra.gmra.mrb[20].mxu1 %vm832_vm3, %v1287_v36 }
 0x6ec   : > { %1635 = vmatprep.mubr.bf16.mxu1 %v2543_v42  ;;  %1604 = vmatpush1.bf16.msra.mxu1 %v2368_v39  ;;  %v2379_v42 = vld [vmem:[%s2705_s23 + $0x244] ss:$16 sps:$4 sm:$0xff]   ;;  %v1387_v39 = vrot.slane %v2071_v57, %v2787_v58  ;;  %s348_s23 = scalar_lea.vmem %s2982_s7, %s1929_s20 }
 0x6ed   : > { %1605 = vmatprep.subr.bf16.mxu1 %v2376_v43  ;;  %1564 = vmatprep.subr.bf16.mxu0 %v2379_v42 }
 0x6ee   : > { %1565 = vmatpush1.bf16.msra.mxu0 %v2377_v46 }
 0x6ef   : > { %1566 = vmatprep.subr.bf16.mxu0 %v2385_v10 }
 0x6f0   : > { %1606 = vmatpush1.bf16.msra.mxu1 %v2374_v54 }
 0x6f1   : > { %1607 = vmatprep.subr.bf16.mxu1 %v2382_v45 }
 0x6f2   : > { %1567 = vmatpush1.bf16.msra.mxu0 %v2383_v48 }
 0x6f3   : > { %1568 = vmatprep.subr.bf16.mxu0 %v2391_v50 }
 0x6f4   : > { %1608 = vmatpush1.bf16.msra.mxu1 %v2380_v2 }
 0x6f5   : > { %1609 = vmatprep.subr.bf16.mxu1 %v2388_v47 }
 0x6f6   : > { %1569 = vmatpush1.bf16.msra.mxu0 %v2389_v53 }
 0x6f7   : > { %1570 = vmatprep.subr.bf16.mxu0 %v2397_v60 }
 0x6f8   : > { %1610 = vmatpush1.bf16.msra.mxu1 %v2386_v49 }
 0x6f9   : > { %1611 = vmatprep.subr.bf16.mxu1 %v2394_v52 }
 0x6fa   : > { %1571 = vmatpush1.bf16.msra.mxu0 %v2395_v62 }
 0x6fb   : > { %1572 = vmatprep.subr.bf16.mxu0 %v2403_v3 }
 0x6fc   : > { %1612 = vmatpush1.bf16.msra.mxu1 %v2392_v59 }
 0x6fd   : > { %1613 = vmatprep.subr.bf16.mxu1 %v2400_v61 }
 0x6fe   : > { %1573 = vmatpush1.bf16.msra.mxu0 %v2401_v5 }
 0x6ff   : > { %1574 = vmatprep.subr.bf16.mxu0 %v2409_v7 }
 0x700   : > { %1614 = vmatpush1.bf16.msra.mxu1 %v2398_v63 }
 0x701   : > { %1615 = vmatprep.subr.bf16.mxu1 %v2406_v4 }
 0x702   : > { %1575 = vmatpush1.bf16.msra.mxu0 %v2407_v9 }
 0x703   : > { %2180 = vmatprep.subr.bf16.mxu0 %v2541_v0 }
 0x704   : > { %1616 = vmatpush1.bf16.msra.mxu1 %v2404_v6 }
 0x705   : > { %1617 = vmatprep.subr.bf16.mxu1 %v2412_v8 }
 0x708   : > { %1618 = vmatpush1.bf16.msra.mxu1 %v2410_v11 }
 0x709   : > { %2186 = vmatprep.subr.bf16.mxu1 %v2541_v0 }
 0x775   : > { %v1279_v12 = vpop.xlane.xlu0 %1278 }
 0x776   : > { %v1283_v14 = vadd.f32 1e-30, %v1279_v12 }
 0x777   : > { %v1282_v13 = vpop.xlane.xlu1 %1281 }
 0x778   : > { %v1284_v15 = vadd.f32 1e-30, %v1282_v13  ;;  %2425 = vrcp.f32 %v1283_v14 }
 0x77a   : > { %2427 = vrcp.f32 %v1284_v15 }
 0x782   : > { %v2426_v19 = vpop.eup %2425 }
 0x784   : > { %v2428_v26 = vpop.eup %2427 }
 0x7be   : > { %v1326_v20 = vpop.f32.mrb[20].mxu1 }
 0x7bf   : > { %v1333_v23 = vmul.f32 %v2426_v19, %v1326_v20  ;;  %v2178_v24 = vpop.f32.mrb[21].mxu1 }
 0x7c0   : > { %v1329_v27 = vpop.f32.mrb[22].mxu1 }
 0x7c1   : > { %v1335_v29 = vadd.f32 %v1333_v23, %v1210_v22  ;;  %v1334_v31 = vmul.f32 %v2428_v26, %v1329_v27  ;;  %v2179_v32 = vpop.f32.mrb[23].mxu1 }
 0x7c3   : > { %v1336_v33 = vadd.f32 %v1334_v31, %v1214_v28  ;;  %v1337_v34 = vmax.f32 %v1335_v29, 0.0 }
 0x7c5   : > { %v1338_v35 = vmax.f32 %v1336_v33, 0.0 }
 0x7c7   : > { %v1378_v36 = vpack.c.bf16 %v1338_v35, %v1337_v34 }
 0x7c9   : > { %1593 = vmatmul.mubr.bf16.vlgmr.msra.gmra.mrb[12].mxu0 %v1378_v36  ;;  %1636 = vmatmul.mubr.bf16.vlgmr.msra.gmra.mrb[24].mxu1 %v1378_v36 }
 0x7ca   : > { %2182 = vmatprep.mubr.msk.bf16.mxu0 %vm2542_vm0, %v2541_v0  ;;  %2188 = vmatprep.mubr.msk.bf16.mxu1 %vm2542_vm0, %v2541_v0 }
 0x89c   : > { %v1594_v37 = vpop.f32.mrb[12].mxu0  ;;  %v1637_v38 = vpop.f32.mrb[24].mxu1 }
 0x89d   : > { %v1596_v40 = vpop.f32.mrb[13].mxu0  ;;  %v1639_v41 = vpop.f32.mrb[25].mxu1  ;;  %v1595_v54 = vadd.f32 %v1594_v37, %v1383_v51  ;;  %v1638_v42 = vadd.f32 %v1637_v38, %v1391_v1 }
 0x89e   : > { %v1598_v43 = vpop.f32.mrb[14].mxu0  ;;  %v1641_v44 = vpop.f32.mrb[26].mxu1  ;;  %v1597_v47 = vadd.f32 %v1596_v40, %v1387_v39 }
 0x89f   : > { %v1599_v45 = vadd.f32 %v1598_v43, %v1383_v51  ;;  %v1642_v46 = vadd.f32 %v1641_v44, %v1391_v1  ;;  %v1600_v2 = vpop.f32.mrb[15].mxu0  ;;  %v1643_v10 = vpop.f32.mrb[27].mxu1 }
 0x8a0   : > { %v1601_v48 = vadd.f32 %v1600_v2, %v1387_v39 }
 0x8a1   : > { %v1646_v49 = vpack.c.bf16 %v1599_v45, %v1595_v54  ;;  %v1718_v55 = vpack.c.bf16 %v1642_v46, %v1638_v42 }
 0x8a2   : > { %v1647_v50 = vpack.c.bf16 %v1601_v48, %v1597_v47 }
 0x8a3   : > { %2187 = vmatpush3.bf16.msra.mxu1 %v1718_v55 }
 0x8a4   : > { %2181 = vmatpush3.bf16.xpose.msra.mxu0 %v1647_v50 }
 0x8a5   : > { %2192 = vmatprep.subr.bf16.mxu0 %v2541_v0 }
 0x8ab   : > { %2183 = vmatmul.mubr.bf16.vlgmr.msra.gmra.mrb[16].mxu0 %v1646_v49 }
 0x8ac   : > { %2194 = vmatprep.mubr.msk.bf16.mxu0 %vm2542_vm0, %v2541_v0 }
 0x97e   : > { %v1682_v56 = vpop.f32.mrb[16].mxu0 }
 0x97f   : > { %v1689_v58 = vmul.f32 0.088388346, %v1682_v56  ;;  %v2184_v52 = vpop.f32.mrb[17].mxu0 }
 0x980   : > { %v1685_v53 = vpop.f32.mrb[18].mxu0 }
 0x981   : > { %v1690_v59 = vmul.f32 0.088388346, %v1685_v53  ;;  %v2185_v60 = vpop.f32.mrb[19].mxu0  ;;  %v1691_v61 = vadd.f32 %v1689_v58, %v2812_v21 }
 0x983   : > { %v1693_v62 = vsel %vm832_vm3, %v1691_v61, -inf  ;;  %v1692_v63 = vadd.f32 %v1690_v59, %v2814_v25 }
 0x984   : > { %1694 = vmax.xlane.f32.xlu0 %v1693_v62 }
 0x985   : > { %v1696_v3 = vsel %vm832_vm3, %v1692_v63, -inf }
 0x986   : > { %1697 = vmax.xlane.f32.xlu1 %v1696_v3 }
 0xa11   : > { %v1695_v4 = vpop.xlane.xlu0 %1694 }
 0xa12   : > { %v1699_v5 = vsub.f32 %v1691_v61, %v1695_v4 }
 0xa13   : > { %v1698_v6 = vpop.xlane.xlu1 %1697 }
 0xa14   : > { %v1701_v0 = vmul.f32 1.442695, %v1699_v5  ;;  %v1700_v7 = vsub.f32 %v1692_v63, %v1698_v6 }
 0xa16   : > { %2429 = vpow2.f32 %v1701_v0  ;;  %v1703_v8 = vmul.f32 1.442695, %v1700_v7 }
 0xa18   : > { %2431 = vpow2.f32 %v1703_v8 }
 0xa20   : > { %v2430_v9 = vpop.eup %2429 }
 0xa21   : > { %v1705_v11 = vmul.f32 %v2430_v9, %v2806_v17  ;;  %v1395_v17 = vrot.slane %v2071_v57, %v2860_v30  ;;  %v1771_v30 = vld [vmem:[%s2981_s6] sm:$0x1] }
 0xa22   : > { %v2432_v21 = vpop.eup %2431 }
 0xa23   : > { %v1707_v12 = vsel %vm832_vm3, %v1705_v11, 0.0  ;;  %v1706_v25 = vmul.f32 %v2432_v21, %v2808_v18  ;;  %v1640_v24 = vadd.f32 %v1639_v41, %v1395_v17  ;;  %v1644_v29 = vadd.f32 %v1643_v10, %v1395_v17 }
 0xa24   : > { %1708 = vadd.xlane.f32.xlu0 %v1707_v12 }
 0xa25   : > { %v1710_v13 = vsel %vm832_vm3, %v1706_v25, 0.0  ;;  %v1717_v14 = vpack.c.bf16 %v1706_v25, %v1705_v11 }
 0xa26   : > { %1711 = vadd.xlane.f32.xlu1 %v1710_v13 }
 0xa27   : > { %2189 = vmatmul.mubr.msk.bf16.vlgmr.msra.gmra.mrb[28].mxu1 %vm832_vm3, %v1717_v14 }
 0xab1   : > { %v1709_v15 = vpop.xlane.xlu0 %1708 }
 0xab2   : > { %v1713_v19 = vadd.f32 1e-30, %v1709_v15 }
 0xab3   : > { %v1712_v16 = vpop.xlane.xlu1 %1711 }
 0xab4   : > { %v1714_v20 = vadd.f32 1e-30, %v1712_v16  ;;  %2433 = vrcp.f32 %v1713_v19 }
 0xab6   : > { %2435 = vrcp.f32 %v1714_v20 }
 0xabe   : > { %v2434_v22 = vpop.eup %2433 }
 0xac0   : > { %v2436_v27 = vpop.eup %2435 }
 0xafa   : > { %v1756_v23 = vpop.f32.mrb[28].mxu1 }
 0xafb   : > { %v1763_v18 = vmul.f32 %v2434_v22, %v1756_v23  ;;  %v2190_v26 = vpop.f32.mrb[29].mxu1 }
 0xafc   : > { %v1759_v28 = vpop.f32.mrb[30].mxu1 }
 0xafd   : > { %v1765_v31 = vadd.f32 %v1763_v18, %v1640_v24  ;;  %v1764_v32 = vmul.f32 %v2436_v27, %v1759_v28  ;;  %v2191_v33 = vpop.f32.mrb[31].mxu1 }
 0xaff   : > { %v1766_v34 = vadd.f32 %v1764_v32, %v1644_v29  ;;  %v1767_v35 = vmax.f32 %v1765_v31, 0.0 }
 0xb01   : > { %v1768_v36 = vmax.f32 %v1766_v34, 0.0 }
 0xb03   : > { %v1774_v51 = vpack.c.bf16 %v1768_v36, %v1767_v35 }
 0xb05   : > { %2193 = vmatpush3.bf16.msra.mxu0 %v1774_v51 }
 0xb08   : > { %2195 = vmatmul.mubr.msk.bf16.vlgmr.msra.gmra.mrb[20].mxu0 %vm832_vm3, %v1771_v30 }
 0xbdb   : > { %v1812_v57 = vpop.f32.mrb[20].mxu0 }
 0xbdc   : > { %1818 = vst [vmem:[%s348_s23] sm:$0x3] %v1812_v57  ;;  %v2196_v1 = vpop.f32.mrb[21].mxu0 }
 0xbdd   : > { %v1815_v37 = vpop.f32.mrb[22].mxu0 }
 0xbde   : > { %v2197_v38 = vpop.f32.mrb[23].mxu0 }
 0xbdf PF: > { %p18_p8 = scmp.ge.s32.totalorder %s2629_s11, 4   ;;  %s2994_s24 = smov %s2525_s25 }
 0xbe0   : > { %s2995_s25 = smov %s2529_s26  ;;  %s2996_s26 = smov %s2655_s14 }
 0xbe1   : > { %s2997_s27 = smov %s2629_s11  ;;  %20 = sbr.rel (!%p18_p8) target bundleno = 4 (0x4), region = 103 }
 0xbe8   :  { %1838 = vsyncpa [#allocation4], 1 }
 0xbe9   :  { %1840 = vsyncpa [#allocation4 + $0x1], 1 }
 0xbea   :  { %1841 = vsyncpa [#allocation6], 1 }
 0xbeb   :  { %1843 = vsyncpa [#allocation6 + $0x1], 1 }

</bundles_post_ra>
